<compile_context>
chip_gen: v6e
topology: v6e:2x2x1
jax: 0.10.0
libtpu: 0.0.40
codegen_flags: <defaults>
</compile_context>

<pallas_src>
import functools
import math

import jax
import jax.numpy as jnp
from jax.experimental import pallas as pl
from jax.experimental.pallas import tpu as pltpu


# ---------------------------------------------------------------------------
# Small helpers
# ---------------------------------------------------------------------------
def _round_up(x, m):
    return (x + m - 1) // m * m


def _choose_tm(m):
    """Row tile: big enough to amortize per-step overhead, but always >=2 grid steps
    when m > 128 so both v7x TensorCores get work (no effect on v5e/v6e)."""
    if m <= 128:
        return m
    half = -(-m // 2)
    half = -(-half // 8) * 8          # sublane multiple
    return min(512, half)             # v6e could sweep toward 1024; 512 is v7x/v5e-safe


def _choose_tk(k):
    if k <= 512:
        return k                      # single K block == full array dim (legal)
    for t in (512, 384, 256, 128):
        if k % t == 0:
            return t
    return k                          # TODO(synk): pad K to a 128 multiple for odd, huge K


def _choose_tn(n):
    # n is always a multiple of 128 here.
    for t in (256, 128):
        if n % t == 0:
            return t
    return n


# ---------------------------------------------------------------------------
# Pallas kernel 1: tiled (M, N, K) matmul with folded-BN bias [+ skip] [+ ReLU]
# ---------------------------------------------------------------------------
def _mm_kernel(x_ref, w_ref, b_ref, o_ref, acc_ref, *, apply_relu):
    @pl.when(pl.program_id(2) == 0)
    def _():
        acc_ref[...] = jnp.zeros_like(acc_ref)

    acc_ref[...] += jnp.dot(x_ref[...], w_ref[...],
                            preferred_element_type=jnp.float32)

    @pl.when(pl.program_id(2) == pl.num_programs(2) - 1)
    def _():
        y = acc_ref[...] + b_ref[...]
        if apply_relu:
            y = jnp.maximum(y, 0.0)
        o_ref[...] = y.astype(o_ref.dtype)


def _mm_skip_kernel(x_ref, w_ref, b_ref, s_ref, o_ref, acc_ref):
    @pl.when(pl.program_id(2) == 0)
    def _():
        acc_ref[...] = jnp.zeros_like(acc_ref)

    acc_ref[...] += jnp.dot(x_ref[...], w_ref[...],
                            preferred_element_type=jnp.float32)

    @pl.when(pl.program_id(2) == pl.num_programs(2) - 1)
    def _():
        # skip is stored bf16 in HBM; the add stays in f32 (no double rounding).
        y = acc_ref[...] + b_ref[...] + s_ref[...].astype(jnp.float32)
        o_ref[...] = jnp.maximum(y, 0.0).astype(o_ref.dtype)


def fused_conv_matmul(x_col, w_mat, scale, bias, *, apply_relu, skip=None,
                      out_dtype=jnp.bfloat16):
    """[M,K] x [K,Cout] matmul with folded-BN bias, optional skip add, optional ReLU.

    bf16 MXU operands, f32 VMEM accumulator over a K grid axis; Cout is zero-padded to
    a multiple of 128 so stores are lane-dense (a no-op for production widths)."""
    M, K = x_col.shape
    Cout = w_mat.shape[1]
    Np = _round_up(Cout, 128)

    w = (w_mat * scale[None, :]).astype(jnp.bfloat16)   # fold BN scale into weights
    b = bias.astype(jnp.float32)
    if Np != Cout:
        w = jnp.pad(w, ((0, 0), (0, Np - Cout)))
        b = jnp.pad(b, (0, Np - Cout))
        if skip is not None:
            skip = jnp.pad(skip, ((0, 0), (0, Np - Cout)))
    b = b.reshape(1, Np)
    x = x_col.astype(jnp.bfloat16)

    tm, tk, tn = _choose_tm(M), _choose_tk(K), _choose_tn(Np)
    grid = (pl.cdiv(M, tm), Np // tn, K // tk)

    in_specs = [
        pl.BlockSpec((tm, tk), lambda i, j, k: (i, k)),
        pl.BlockSpec((tk, tn), lambda i, j, k: (k, j)),
        pl.BlockSpec((1, tn), lambda i, j, k: (0, j)),
    ]
    args = [x, w, b]
    if skip is None:
        kernel = functools.partial(_mm_kernel, apply_relu=apply_relu)
    else:
        kernel = _mm_skip_kernel
        in_specs.append(pl.BlockSpec((tm, tn), lambda i, j, k: (i, j)))
        args.append(skip.astype(jnp.bfloat16))

    out_bytes = jnp.dtype(out_dtype).itemsize
    vmem_need = (2 * (tm * tk * 2 + tk * tn * 2 + tn * 4
                      + (tm * tn * 2 if skip is not None else 0)
                      + tm * tn * out_bytes)
                 + tm * tn * 4)
    vmem_limit = int(min(64 * 2 ** 20, max(4 * vmem_need, 16 * 2 ** 20)))
    flops = 2 * M * K * Np
    bytes_accessed = (M * K * 2 + K * Np * 2 + Np * 4 + M * Np * out_bytes
                      + (M * Np * 2 if skip is not None else 0))

    out = pl.pallas_call(
        kernel,
        out_shape=jax.ShapeDtypeStruct((M, Np), out_dtype),
        grid=grid,
        in_specs=in_specs,
        out_specs=pl.BlockSpec((tm, tn), lambda i, j, k: (i, j)),
        scratch_shapes=[pltpu.VMEM((tm, tn), jnp.float32)],
        compiler_params=pltpu.CompilerParams(
            dimension_semantics=("parallel", "parallel", "arbitrary"),
            vmem_limit_bytes=vmem_limit),
        cost_estimate=pl.CostEstimate(
            flops=int(flops), transcendentals=0,
            bytes_accessed=int(bytes_accessed)),
    )(*args)
    return out if Np == Cout else out[:, :Cout]


# ---------------------------------------------------------------------------
# Pallas kernel 2: grouped (kt,3,3) conv + BN + ReLU, taps streamed in-kernel
# ---------------------------------------------------------------------------
def _grouped_conv_kernel(*refs, n_phase, taps_meta, groups, cg_in, ho, wo):
    phase_refs = refs[:n_phase]
    w_ref, b_ref, o_ref = refs[n_phase], refs[n_phase + 1], refs[n_phase + 2]

    xs = [ref[...] for ref in phase_refs]            # each (1, kt, Ha, Wb, C) bf16
    wv = w_ref[...]                                   # (taps, groups, Cg, cg_out) bf16
    cg_out = wv.shape[-1]

    acc = [jnp.zeros((ho * wo, cg_out), jnp.float32) for _ in range(groups)]
    for t, (p, it, hs, ws) in enumerate(taps_meta):
        win = xs[p][0, it, hs:hs + ho, ws:ws + wo, :]       # (Ho, Wo, C)
        win = win.reshape(ho * wo, cg_in * groups)
        for g in range(groups):
            acc[g] = acc[g] + jnp.dot(
                win[:, g * cg_in:(g + 1) * cg_in], wv[t, g],
                preferred_element_type=jnp.float32)

    y = jnp.concatenate(acc, axis=-1) if groups > 1 else acc[0]
    y = jnp.maximum(y + b_ref[...], 0.0)
    o_ref[...] = y.reshape(o_ref.shape).astype(o_ref.dtype)


def grouped_conv3x3_bn_relu(r, w, scale, bias, *, kt, t_stride, s_stride, groups):
    """Grouped (kt,3,3) conv + folded BN + ReLU on NDHWC input.

    r: [N, D, H, W, C] (bf16).  Returns ([N*Do, Ho*Wo, Cout] bf16, (Do, Ho, Wo)).
    The kt*9 taps are accumulated inside the kernel; the input only crosses HBM once
    (stride-phase decomposition is a pure permutation done in XLA)."""
    N, D, H, W, C = r.shape
    Cout, Cg = w.shape[0], w.shape[1]
    cg_out = Cout // groups

    # Fold BN scale into the weight; relayout to [taps, groups, Cg, cg_out].
    w_s = (w * scale[:, None, None, None, None]).astype(jnp.bfloat16)
    w_r = (w_s.reshape(groups, cg_out, Cg, kt, 3, 3)
               .transpose(3, 4, 5, 0, 2, 1)
               .reshape(kt * 9, groups, Cg, cg_out))
    b = bias.reshape(1, Cout).astype(jnp.float32)

    # Depth taps (kt == 1 for temporal_conv_1x1=True -> no amplification).
    pt = kt // 2
    rp = jnp.pad(r, ((0, 0), (pt, pt), (0, 0), (0, 0), (0, 0))) if pt else r
    Dp = D + 2 * pt
    Do = (Dp - kt) // t_stride + 1
    xt = jnp.stack(
        [rp[:, i:i + t_stride * (Do - 1) + 1:t_stride] for i in range(kt)], axis=2)
    xt = xt.reshape(N * Do, kt, H, W, C)

    # Spatial pad (1,1) + stride-phase decomposition.
    xt = jnp.pad(xt, ((0, 0), (0, 0), (1, 1), (1, 1), (0, 0)))
    Hp, Wp = H + 2, W + 2
    ss = s_stride
    Ho = (Hp - 3) // ss + 1
    Wo = (Wp - 3) // ss + 1
    phases = [xt[:, :, a::ss, b2::ss, :] for a in range(ss) for b2 in range(ss)]
    taps_meta = [((j % ss) * ss + (k % ss), it, j // ss, k // ss)
                 for it in range(kt) for j in range(3) for k in range(3)]

    ND = N * Do
    in_specs = ([pl.BlockSpec((1,) + p.shape[1:], lambda i: (i, 0, 0, 0, 0))
                 for p in phases]
                + [pl.BlockSpec(w_r.shape, lambda i: (0, 0, 0, 0)),
                   pl.BlockSpec((1, Cout), lambda i: (0, 0))])
    out_spec = pl.BlockSpec((1, Ho * Wo, Cout), lambda i: (i, 0, 0))

    blk_bytes = sum(math.prod(p.shape[1:]) * 2 for p in phases)
    w_bytes = math.prod(w_r.shape) * 2
    out_blk_bytes = Ho * Wo * Cout * 2
    vmem_need = (2 * (blk_bytes + out_blk_bytes) + 2 * w_bytes + 4 * Cout
                 + 4 * Ho * Wo * Cout + 2 * blk_bytes)
    vmem_limit = int(min(64 * 2 ** 20, max(4 * vmem_need, 16 * 2 ** 20)))
    flops = 2 * ND * Ho * Wo * kt * 9 * C * Cout // groups
    bytes_accessed = ND * (blk_bytes + out_blk_bytes) + w_bytes + Cout * 4

    kernel = functools.partial(
        _grouped_conv_kernel, n_phase=len(phases), taps_meta=taps_meta,
        groups=groups, cg_in=Cg, ho=Ho, wo=Wo)

    out = pl.pallas_call(
        kernel,
        out_shape=jax.ShapeDtypeStruct((ND, Ho * Wo, Cout), jnp.bfloat16),
        grid=(ND,),
        in_specs=in_specs,
        out_specs=out_spec,
        compiler_params=pltpu.CompilerParams(
            dimension_semantics=("parallel",),
            vmem_limit_bytes=vmem_limit),
        cost_estimate=pl.CostEstimate(
            flops=int(flops), transcendentals=0,
            bytes_accessed=int(bytes_accessed)),
    )(*phases, w_r, b)
    return out, (Do, Ho, Wo)


# ---------------------------------------------------------------------------
# Glue: channels-last im2col (1x1x1 and Tx1x1 only) and weight-matrix builders
# ---------------------------------------------------------------------------
def im2col_3d(x, ksize, stride, padding):
    """x: [N, D, H, W, C] -> ([M, taps*C], (Do, Ho, Wo)); channels fastest."""
    kt, kh, kw = ksize
    st, sh, sw = stride
    pt, ph, pw = padding
    N, D, H, W, C = x.shape
    if (kt, kh, kw) == (1, 1, 1) and (pt, ph, pw) == (0, 0, 0):
        xs = x[:, ::st, ::sh, ::sw, :]
        Do, Ho, Wo = xs.shape[1:4]
        return xs.reshape(N * Do * Ho * Wo, C), (Do, Ho, Wo)

    xp = jnp.pad(x, ((0, 0), (pt, pt), (ph, ph), (pw, pw), (0, 0)))
    Dp, Hp, Wp = D + 2 * pt, H + 2 * ph, W + 2 * pw
    Do = (Dp - kt) // st + 1
    Ho = (Hp - kh) // sh + 1
    Wo = (Wp - kw) // sw + 1
    taps = []
    for i in range(kt):
        for j in range(kh):
            for k in range(kw):
                taps.append(xp[:, i:i + st * Do:st, j:j + sh * Ho:sh,
                               k:k + sw * Wo:sw, :])
    col = jnp.stack(taps, axis=4)                        # [N, Do, Ho, Wo, P, C]
    col = col.reshape(N * Do * Ho * Wo, kt * kh * kw * C)
    return col, (Do, Ho, Wo)


def weight_matrix(w):
    """PyTorch Conv3d weight [Cout, Cin, kt, kh, kw] -> [kt*kh*kw*Cin, Cout]."""
    Cout = w.shape[0]
    return w.transpose(2, 3, 4, 1, 0).reshape(-1, Cout)


def bn_fold(gamma, beta, mean, var, eps=1e-5):
    scale = gamma / jnp.sqrt(var + eps)
    bias = beta - mean * scale
    return scale, bias


# ---------------------------------------------------------------------------
# ResBlock forward (postactivated bottleneck residual + postactivated shortcut)
# ---------------------------------------------------------------------------
def res_block_forward(x, params, *, temporal_kernel_size, temporal_conv_1x1,
                      temporal_stride, spatial_stride, num_groups):
    tk1, tk3 = ((temporal_kernel_size, 1) if temporal_conv_1x1
                else (1, temporal_kernel_size))
    # spatial_stride_1x1 = False -> 1x1 convs use stride 1; 3x3 conv takes the stride.

    xl = x.astype(jnp.bfloat16).transpose(0, 2, 3, 4, 1)   # NCDHW -> NDHWC, bf16 once
    N = xl.shape[0]

    # ---- residual branch -------------------------------------------------
    # branch2a: (tk1,1,1) conv + BN + ReLU (fused matmul, bf16 intermediate)
    col_a, dims_a = im2col_3d(xl, (tk1, 1, 1), (1, 1, 1), (tk1 // 2, 0, 0))
    s_a, b_a = params["bn2a"]
    r = fused_conv_matmul(col_a, weight_matrix(params["w2a"]), s_a, b_a,
                          apply_relu=True, out_dtype=jnp.bfloat16)
    r = r.reshape(N, *dims_a, -1)                           # NDHWC

    # branch2b: grouped (tk3,3,3) conv + BN + ReLU, taps streamed in-kernel
    s_b, b_b = params["bn2b"]
    r, (Do, Ho, Wo) = grouped_conv3x3_bn_relu(
        r, params["w2b"], s_b, b_b, kt=tk3, t_stride=temporal_stride,
        s_stride=spatial_stride, groups=num_groups)
    M2 = N * Do * Ho * Wo
    r = r.reshape(M2, -1)

    # ---- skip branch: strided 1x1x1 conv + BN (postactivated shortcut) ----
    col_s, _ = im2col_3d(xl, (1, 1, 1),
                         (temporal_stride, spatial_stride, spatial_stride),
                         (0, 0, 0))
    s_1, b_1 = params["bn1"]
    skip = fused_conv_matmul(col_s, weight_matrix(params["w1"]), s_1, b_1,
                             apply_relu=False, out_dtype=jnp.bfloat16)

    # branch2c: 1x1x1 conv + BN + residual add + final ReLU, fused in one kernel
    s_c, b_c = params["bn2c"]
    out = fused_conv_matmul(r, weight_matrix(params["w2c"]), s_c, b_c,
                            apply_relu=True, skip=skip, out_dtype=jnp.float32)

    return out.reshape(N, Do, Ho, Wo, -1).transpose(0, 4, 1, 2, 3)   # -> NCDHW


# ---------------------------------------------------------------------------
# Deterministic parameter construction
# ---------------------------------------------------------------------------
def make_params(key, dim_in, dim_out, dim_inner, temporal_kernel_size,
                temporal_conv_1x1, num_groups, bn_eps=1e-5):
    tk1, tk3 = ((temporal_kernel_size, 1) if temporal_conv_1x1
                else (1, temporal_kernel_size))
    ks = jax.random.split(key, 8)

    def conv_w(k, shape):
        return jax.random.normal(k, shape, jnp.float32) * 0.1

    def bn_p(k, c):
        k1, k2, k3, k4 = jax.random.split(k, 4)
        gamma = jax.random.uniform(k1, (c,), jnp.float32, 0.5, 1.5)
        beta = jax.random.normal(k2, (c,), jnp.float32) * 0.1
        mean = jax.random.normal(k3, (c,), jnp.float32) * 0.1
        var = jax.random.uniform(k4, (c,), jnp.float32, 0.5, 1.5)
        return bn_fold(gamma, beta, mean, var, bn_eps)

    return {
        "w2a": conv_w(ks[0], (dim_inner, dim_in, tk1, 1, 1)),
        "bn2a": bn_p(ks[1], dim_inner),
        "w2b": conv_w(ks[2], (dim_inner, dim_inner // num_groups, tk3, 3, 3)),
        "bn2b": bn_p(ks[3], dim_inner),
        "w2c": conv_w(ks[4], (dim_out, dim_inner, 1, 1, 1)),
        "bn2c": bn_p(ks[5], dim_out),
        "w1": conv_w(ks[6], (dim_out, dim_in, 1, 1, 1)),
        "bn1": bn_p(ks[7], dim_out),
    }


if __name__ == "__main__":
    # small ResNeXt3D-style block config
    dim_in, dim_out, dim_inner = 8, 16, 8
    temporal_kernel_size = 3
    temporal_conv_1x1 = True
    temporal_stride, spatial_stride = 2, 2
    num_groups = 2

    key = jax.random.PRNGKey(0)
    k_x, k_p = jax.random.split(key)
    x = jax.random.normal(k_x, (2, dim_in, 4, 8, 8), jnp.float32)   # NCDHW
    params = make_params(k_p, dim_in, dim_out, dim_inner,
                         temporal_kernel_size, temporal_conv_1x1, num_groups)

    fwd = jax.jit(functools.partial(
        res_block_forward,
        temporal_kernel_size=temporal_kernel_size,
        temporal_conv_1x1=temporal_conv_1x1,
        temporal_stride=temporal_stride,
        spatial_stride=spatial_stride,
        num_groups=num_groups))

    out = fwd(x, params)
    jax.block_until_ready(out)
    assert out.shape == (2, dim_out, 2, 4, 4), out.shape
    assert bool(jnp.all(out >= 0.0))   # final ReLU
    print("KERNEL_OK")
</pallas_src>

<mosaic_0001>
module attributes {stable_mosaic.version = 11 : i64} {
  func.func @_mm_kernel(%arg0: i32, %arg1: i32, %arg2: i32, %arg3: memref<64x8xbf16, #tpu.memory_space<vmem>>, %arg4: memref<8x128xbf16, #tpu.memory_space<vmem>>, %arg5: memref<1x128xf32, #tpu.memory_space<vmem>>, %arg6: memref<64x128xbf16, #tpu.memory_space<vmem>>, %arg7: memref<64x128xf32, #tpu.memory_space<vmem>>) attributes {dimension_semantics = [#tpu.dimension_semantics<parallel>, #tpu.dimension_semantics<parallel>, #tpu.dimension_semantics<arbitrary>], iteration_bounds = array<i64: 1, 1, 1>, scalar_prefetch = 0 : i64, scratch_operands = 1 : i64, tpu.core_type = #tpu.core_type<tc>, window_params = [{transform_indices = @transform_0, window_bounds = array<i64: 64, 8>}, {transform_indices = @transform_1, window_bounds = array<i64: 8, 128>}, {transform_indices = @transform_2, window_bounds = array<i64: 1, 128>}, {transform_indices = @transform_3, window_bounds = array<i64: 64, 128>}]} {
    %c0_i32 = arith.constant 0 : i32
    %0 = arith.cmpi eq, %arg2, %c0_i32 : i32
    %1 = arith.extui %0 : i1 to i32
    %c0_i32_0 = arith.constant 0 : i32
    %2 = arith.cmpi ne, %1, %c0_i32_0 : i32
    scf.if %2 {
      %cst_10 = arith.constant 0.000000e+00 : f32
      %12 = vector.broadcast %cst_10 : f32 to vector<64x128xf32>
      %c0_11 = arith.constant 0 : index
      %c0_12 = arith.constant 0 : index
      %13 = vector.load %arg7[%c0_11, %c0_12] : memref<64x128xf32, #tpu.memory_space<vmem>>, vector<64x128xf32>
      tpu.vector_store %arg7[%c0_11, %c0_12], %12 {strides = array<i32>} : memref<64x128xf32, #tpu.memory_space<vmem>>, vector<64x128xf32>,
    } else {
    }
    %c0 = arith.constant 0 : index
    %c0_1 = arith.constant 0 : index
    %3 = vector.load %arg7[%c0, %c0_1] : memref<64x128xf32, #tpu.memory_space<vmem>>, vector<64x128xf32>
    %c0_2 = arith.constant 0 : index
    %c0_3 = arith.constant 0 : index
    %4 = vector.load %arg3[%c0_2, %c0_3] : memref<64x8xbf16, #tpu.memory_space<vmem>>, vector<64x8xbf16>
    %c0_4 = arith.constant 0 : index
    %c0_5 = arith.constant 0 : index
    %5 = vector.load %arg4[%c0_4, %c0_5] : memref<8x128xbf16, #tpu.memory_space<vmem>>, vector<8x128xbf16>
    %cst = arith.constant dense<0.000000e+00> : vector<64x128xf32>
    %6 = tpu.matmul %4, %5, %cst {dimension_numbers = #tpu.dot_dimension_numbers<[1], [0], [0], [1], [0, 0, 1, 1], [], []>} : vector<64x8xbf16>, vector<8x128xbf16>, vector<64x128xf32> -> vector<64x128xf32>
    %7 = arith.addf %3, %6 : vector<64x128xf32>
    %c0_6 = arith.constant 0 : index
    %c0_7 = arith.constant 0 : index
    %8 = vector.load %arg7[%c0_6, %c0_7] : memref<64x128xf32, #tpu.memory_space<vmem>>, vector<64x128xf32>
    tpu.vector_store %arg7[%c0_6, %c0_7], %7 {strides = array<i32>} : memref<64x128xf32, #tpu.memory_space<vmem>>, vector<64x128xf32>,
    %c0_i32_8 = arith.constant 0 : i32
    %9 = arith.cmpi eq, %arg2, %c0_i32_8 : i32
    %10 = arith.extui %9 : i1 to i32
    %c0_i32_9 = arith.constant 0 : i32
    %11 = arith.cmpi ne, %10, %c0_i32_9 : i32
    scf.if %11 {
      %c0_10 = arith.constant 0 : index
      %c0_11 = arith.constant 0 : index
      %12 = vector.load %arg7[%c0_10, %c0_11] : memref<64x128xf32, #tpu.memory_space<vmem>>, vector<64x128xf32>
      %c0_12 = arith.constant 0 : index
      %c0_13 = arith.constant 0 : index
      %13 = vector.load %arg5[%c0_12, %c0_13] : memref<1x128xf32, #tpu.memory_space<vmem>>, vector<1x128xf32>
      %14 = vector.broadcast %13 : vector<1x128xf32> to vector<64x128xf32>
      %15 = arith.addf %12, %14 : vector<64x128xf32>
      %16 = arith.truncf %15 : vector<64x128xf32> to vector<64x128xbf16>
      %c0_14 = arith.constant 0 : index
      %c0_15 = arith.constant 0 : index
      %17 = vector.load %arg6[%c0_14, %c0_15] : memref<64x128xbf16, #tpu.memory_space<vmem>>, vector<64x128xbf16>
      tpu.vector_store %arg6[%c0_14, %c0_15], %16 {strides = array<i32>} : memref<64x128xbf16, #tpu.memory_space<vmem>>, vector<64x128xbf16>,
    } else {
    }
    return
  }
  func.func @transform_0(%arg0: i32, %arg1: i32, %arg2: i32) -> (i32, i32) {
    %c0_i32 = arith.constant 0 : i32
    return %arg0, %arg2 : i32, i32
  }
  func.func @transform_1(%arg0: i32, %arg1: i32, %arg2: i32) -> (i32, i32) {
    %c0_i32 = arith.constant 0 : i32
    return %arg2, %arg1 : i32, i32
  }
  func.func @transform_2(%arg0: i32, %arg1: i32, %arg2: i32) -> (i32, i32) {
    %c0_i32 = arith.constant 0 : i32
    %c0_i32_0 = arith.constant 0 : i32
    return %c0_i32, %arg1 : i32, i32
  }
  func.func @transform_3(%arg0: i32, %arg1: i32, %arg2: i32) -> (i32, i32) {
    %c0_i32 = arith.constant 0 : i32
    return %arg0, %arg1 : i32, i32
  }
}

module attributes {stable_mosaic.version = 11 : i64} {
  func.func @_mm_kernel(%arg0: i32, %arg1: i32, %arg2: i32, %arg3: memref<256x24xbf16, #tpu.memory_space<vmem>>, %arg4: memref<24x128xbf16, #tpu.memory_space<vmem>>, %arg5: memref<1x128xf32, #tpu.memory_space<vmem>>, %arg6: memref<256x128xbf16, #tpu.memory_space<vmem>>, %arg7: memref<256x128xf32, #tpu.memory_space<vmem>>) attributes {dimension_semantics = [#tpu.dimension_semantics<parallel>, #tpu.dimension_semantics<parallel>, #tpu.dimension_semantics<arbitrary>], iteration_bounds = array<i64: 2, 1, 1>, scalar_prefetch = 0 : i64, scratch_operands = 1 : i64, tpu.core_type = #tpu.core_type<tc>, window_params = [{transform_indices = @transform_0, window_bounds = array<i64: 256, 24>}, {transform_indices = @transform_1, window_bounds = array<i64: 24, 128>}, {transform_indices = @transform_2, window_bounds = array<i64: 1, 128>}, {transform_indices = @transform_3, window_bounds = array<i64: 256, 128>}]} {
    %c0_i32 = arith.constant 0 : i32
    %0 = arith.cmpi eq, %arg2, %c0_i32 : i32
    %1 = arith.extui %0 : i1 to i32
    %c0_i32_0 = arith.constant 0 : i32
    %2 = arith.cmpi ne, %1, %c0_i32_0 : i32
    scf.if %2 {
      %cst_10 = arith.constant 0.000000e+00 : f32
      %12 = vector.broadcast %cst_10 : f32 to vector<256x128xf32>
      %c0_11 = arith.constant 0 : index
      %c0_12 = arith.constant 0 : index
      %13 = vector.load %arg7[%c0_11, %c0_12] : memref<256x128xf32, #tpu.memory_space<vmem>>, vector<256x128xf32>
      tpu.vector_store %arg7[%c0_11, %c0_12], %12 {strides = array<i32>} : memref<256x128xf32, #tpu.memory_space<vmem>>, vector<256x128xf32>,
    } else {
    }
    %c0 = arith.constant 0 : index
    %c0_1 = arith.constant 0 : index
    %3 = vector.load %arg7[%c0, %c0_1] : memref<256x128xf32, #tpu.memory_space<vmem>>, vector<256x128xf32>
    %c0_2 = arith.constant 0 : index
    %c0_3 = arith.constant 0 : index
    %4 = vector.load %arg3[%c0_2, %c0_3] : memref<256x24xbf16, #tpu.memory_space<vmem>>, vector<256x24xbf16>
    %c0_4 = arith.constant 0 : index
    %c0_5 = arith.constant 0 : index
    %5 = vector.load %arg4[%c0_4, %c0_5] : memref<24x128xbf16, #tpu.memory_space<vmem>>, vector<24x128xbf16>
    %cst = arith.constant dense<0.000000e+00> : vector<256x128xf32>
    %6 = tpu.matmul %4, %5, %cst {dimension_numbers = #tpu.dot_dimension_numbers<[1], [0], [0], [1], [0, 0, 1, 1], [], []>} : vector<256x24xbf16>, vector<24x128xbf16>, vector<256x128xf32> -> vector<256x128xf32>
    %7 = arith.addf %3, %6 : vector<256x128xf32>
    %c0_6 = arith.constant 0 : index
    %c0_7 = arith.constant 0 : index
    %8 = vector.load %arg7[%c0_6, %c0_7] : memref<256x128xf32, #tpu.memory_space<vmem>>, vector<256x128xf32>
    tpu.vector_store %arg7[%c0_6, %c0_7], %7 {strides = array<i32>} : memref<256x128xf32, #tpu.memory_space<vmem>>, vector<256x128xf32>,
    %c0_i32_8 = arith.constant 0 : i32
    %9 = arith.cmpi eq, %arg2, %c0_i32_8 : i32
    %10 = arith.extui %9 : i1 to i32
    %c0_i32_9 = arith.constant 0 : i32
    %11 = arith.cmpi ne, %10, %c0_i32_9 : i32
    scf.if %11 {
      %c0_10 = arith.constant 0 : index
      %c0_11 = arith.constant 0 : index
      %12 = vector.load %arg7[%c0_10, %c0_11] : memref<256x128xf32, #tpu.memory_space<vmem>>, vector<256x128xf32>
      %c0_12 = arith.constant 0 : index
      %c0_13 = arith.constant 0 : index
      %13 = vector.load %arg5[%c0_12, %c0_13] : memref<1x128xf32, #tpu.memory_space<vmem>>, vector<1x128xf32>
      %14 = vector.broadcast %13 : vector<1x128xf32> to vector<256x128xf32>
      %15 = arith.addf %12, %14 : vector<256x128xf32>
      %cst_14 = arith.constant 0.000000e+00 : f32
      %16 = vector.broadcast %cst_14 : f32 to vector<256x128xf32>
      %17 = arith.maximumf %15, %16 : vector<256x128xf32>
      %18 = arith.truncf %17 : vector<256x128xf32> to vector<256x128xbf16>
      %c0_15 = arith.constant 0 : index
      %c0_16 = arith.constant 0 : index
      %19 = vector.load %arg6[%c0_15, %c0_16] : memref<256x128xbf16, #tpu.memory_space<vmem>>, vector<256x128xbf16>
      tpu.vector_store %arg6[%c0_15, %c0_16], %18 {strides = array<i32>} : memref<256x128xbf16, #tpu.memory_space<vmem>>, vector<256x128xbf16>,
    } else {
    }
    return
  }
  func.func @transform_0(%arg0: i32, %arg1: i32, %arg2: i32) -> (i32, i32) {
    %c0_i32 = arith.constant 0 : i32
    return %arg0, %arg2 : i32, i32
  }
  func.func @transform_1(%arg0: i32, %arg1: i32, %arg2: i32) -> (i32, i32) {
    %c0_i32 = arith.constant 0 : i32
    return %arg2, %arg1 : i32, i32
  }
  func.func @transform_2(%arg0: i32, %arg1: i32, %arg2: i32) -> (i32, i32) {
    %c0_i32 = arith.constant 0 : i32
    %c0_i32_0 = arith.constant 0 : i32
    return %c0_i32, %arg1 : i32, i32
  }
  func.func @transform_3(%arg0: i32, %arg1: i32, %arg2: i32) -> (i32, i32) {
    %c0_i32 = arith.constant 0 : i32
    return %arg0, %arg1 : i32, i32
  }
}

module attributes {stable_mosaic.version = 11 : i64} {
  func.func @_mm_skip_kernel(%arg0: i32, %arg1: i32, %arg2: i32, %arg3: memref<64x8xbf16, #tpu.memory_space<vmem>>, %arg4: memref<8x128xbf16, #tpu.memory_space<vmem>>, %arg5: memref<1x128xf32, #tpu.memory_space<vmem>>, %arg6: memref<64x128xbf16, #tpu.memory_space<vmem>>, %arg7: memref<64x128xf32, #tpu.memory_space<vmem>>, %arg8: memref<64x128xf32, #tpu.memory_space<vmem>>) attributes {dimension_semantics = [#tpu.dimension_semantics<parallel>, #tpu.dimension_semantics<parallel>, #tpu.dimension_semantics<arbitrary>], iteration_bounds = array<i64: 1, 1, 1>, scalar_prefetch = 0 : i64, scratch_operands = 1 : i64, tpu.core_type = #tpu.core_type<tc>, window_params = [{transform_indices = @transform_0, window_bounds = array<i64: 64, 8>}, {transform_indices = @transform_1, window_bounds = array<i64: 8, 128>}, {transform_indices = @transform_2, window_bounds = array<i64: 1, 128>}, {transform_indices = @transform_3, window_bounds = array<i64: 64, 128>}, {transform_indices = @transform_4, window_bounds = array<i64: 64, 128>}]} {
    %c0_i32 = arith.constant 0 : i32
    %0 = arith.cmpi eq, %arg2, %c0_i32 : i32
    %1 = arith.extui %0 : i1 to i32
    %c0_i32_0 = arith.constant 0 : i32
    %2 = arith.cmpi ne, %1, %c0_i32_0 : i32
    scf.if %2 {
      %cst_10 = arith.constant 0.000000e+00 : f32
      %12 = vector.broadcast %cst_10 : f32 to vector<64x128xf32>
      %c0_11 = arith.constant 0 : index
      %c0_12 = arith.constant 0 : index
      %13 = vector.load %arg8[%c0_11, %c0_12] : memref<64x128xf32, #tpu.memory_space<vmem>>, vector<64x128xf32>
      tpu.vector_store %arg8[%c0_11, %c0_12], %12 {strides = array<i32>} : memref<64x128xf32, #tpu.memory_space<vmem>>, vector<64x128xf32>,
    } else {
    }
    %c0 = arith.constant 0 : index
    %c0_1 = arith.constant 0 : index
    %3 = vector.load %arg8[%c0, %c0_1] : memref<64x128xf32, #tpu.memory_space<vmem>>, vector<64x128xf32>
    %c0_2 = arith.constant 0 : index
    %c0_3 = arith.constant 0 : index
    %4 = vector.load %arg3[%c0_2, %c0_3] : memref<64x8xbf16, #tpu.memory_space<vmem>>, vector<64x8xbf16>
    %c0_4 = arith.constant 0 : index
    %c0_5 = arith.constant 0 : index
    %5 = vector.load %arg4[%c0_4, %c0_5] : memref<8x128xbf16, #tpu.memory_space<vmem>>, vector<8x128xbf16>
    %cst = arith.constant dense<0.000000e+00> : vector<64x128xf32>
    %6 = tpu.matmul %4, %5, %cst {dimension_numbers = #tpu.dot_dimension_numbers<[1], [0], [0], [1], [0, 0, 1, 1], [], []>} : vector<64x8xbf16>, vector<8x128xbf16>, vector<64x128xf32> -> vector<64x128xf32>
    %7 = arith.addf %3, %6 : vector<64x128xf32>
    %c0_6 = arith.constant 0 : index
    %c0_7 = arith.constant 0 : index
    %8 = vector.load %arg8[%c0_6, %c0_7] : memref<64x128xf32, #tpu.memory_space<vmem>>, vector<64x128xf32>
    tpu.vector_store %arg8[%c0_6, %c0_7], %7 {strides = array<i32>} : memref<64x128xf32, #tpu.memory_space<vmem>>, vector<64x128xf32>,
    %c0_i32_8 = arith.constant 0 : i32
    %9 = arith.cmpi eq, %arg2, %c0_i32_8 : i32
    %10 = arith.extui %9 : i1 to i32
    %c0_i32_9 = arith.constant 0 : i32
    %11 = arith.cmpi ne, %10, %c0_i32_9 : i32
    scf.if %11 {
      %c0_10 = arith.constant 0 : index
      %c0_11 = arith.constant 0 : index
      %12 = vector.load %arg8[%c0_10, %c0_11] : memref<64x128xf32, #tpu.memory_space<vmem>>, vector<64x128xf32>
      %c0_12 = arith.constant 0 : index
      %c0_13 = arith.constant 0 : index
      %13 = vector.load %arg5[%c0_12, %c0_13] : memref<1x128xf32, #tpu.memory_space<vmem>>, vector<1x128xf32>
      %14 = vector.broadcast %13 : vector<1x128xf32> to vector<64x128xf32>
      %15 = arith.addf %12, %14 : vector<64x128xf32>
      %c0_14 = arith.constant 0 : index
      %c0_15 = arith.constant 0 : index
      %16 = vector.load %arg6[%c0_14, %c0_15] : memref<64x128xbf16, #tpu.memory_space<vmem>>, vector<64x128xbf16>
      %17 = arith.extf %16 : vector<64x128xbf16> to vector<64x128xf32>
      %18 = arith.addf %15, %17 : vector<64x128xf32>
      %cst_16 = arith.constant 0.000000e+00 : f32
      %19 = vector.broadcast %cst_16 : f32 to vector<64x128xf32>
      %20 = arith.maximumf %18, %19 : vector<64x128xf32>
      %c0_17 = arith.constant 0 : index
      %c0_18 = arith.constant 0 : index
      %21 = vector.load %arg7[%c0_17, %c0_18] : memref<64x128xf32, #tpu.memory_space<vmem>>, vector<64x128xf32>
      tpu.vector_store %arg7[%c0_17, %c0_18], %20 {strides = array<i32>} : memref<64x128xf32, #tpu.memory_space<vmem>>, vector<64x128xf32>,
    } else {
    }
    return
  }
  func.func @transform_0(%arg0: i32, %arg1: i32, %arg2: i32) -> (i32, i32) {
    %c0_i32 = arith.constant 0 : i32
    return %arg0, %arg2 : i32, i32
  }
  func.func @transform_1(%arg0: i32, %arg1: i32, %arg2: i32) -> (i32, i32) {
    %c0_i32 = arith.constant 0 : i32
    return %arg2, %arg1 : i32, i32
  }
  func.func @transform_2(%arg0: i32, %arg1: i32, %arg2: i32) -> (i32, i32) {
    %c0_i32 = arith.constant 0 : i32
    %c0_i32_0 = arith.constant 0 : i32
    return %c0_i32, %arg1 : i32, i32
  }
  func.func @transform_3(%arg0: i32, %arg1: i32, %arg2: i32) -> (i32, i32) {
    %c0_i32 = arith.constant 0 : i32
    return %arg0, %arg1 : i32, i32
  }
  func.func @transform_4(%arg0: i32, %arg1: i32, %arg2: i32) -> (i32, i32) {
    %c0_i32 = arith.constant 0 : i32
    return %arg0, %arg1 : i32, i32
  }
}

module attributes {stable_mosaic.version = 11 : i64} {
  func.func @_grouped_conv_kernel(%arg0: i32, %arg1: memref<1x1x5x5x8xbf16, #tpu.memory_space<vmem>>, %arg2: memref<1x1x5x5x8xbf16, #tpu.memory_space<vmem>>, %arg3: memref<1x1x5x5x8xbf16, #tpu.memory_space<vmem>>, %arg4: memref<1x1x5x5x8xbf16, #tpu.memory_space<vmem>>, %arg5: memref<9x2x4x4xbf16, #tpu.memory_space<vmem>>, %arg6: memref<1x8xf32, #tpu.memory_space<vmem>>, %arg7: memref<1x16x8xbf16, #tpu.memory_space<vmem>>) attributes {dimension_semantics = [#tpu.dimension_semantics<parallel>], iteration_bounds = array<i64: 4>, scalar_prefetch = 0 : i64, scratch_operands = 0 : i64, tpu.core_type = #tpu.core_type<tc>, window_params = [{transform_indices = @transform_0, window_bounds = array<i64: 1, 1, 5, 5, 8>}, {transform_indices = @transform_1, window_bounds = array<i64: 1, 1, 5, 5, 8>}, {transform_indices = @transform_2, window_bounds = array<i64: 1, 1, 5, 5, 8>}, {transform_indices = @transform_3, window_bounds = array<i64: 1, 1, 5, 5, 8>}, {pipeline_mode = #tpu.pipeline_mode<synchronous>, transform_indices = @transform_4, window_bounds = array<i64: 9, 2, 4, 4>}, {pipeline_mode = #tpu.pipeline_mode<synchronous>, transform_indices = @transform_5, window_bounds = array<i64: 1, 8>}, {transform_indices = @transform_6, window_bounds = array<i64: 1, 16, 8>}]} {
    %c0 = arith.constant 0 : index
    %c0_0 = arith.constant 0 : index
    %c0_1 = arith.constant 0 : index
    %c0_2 = arith.constant 0 : index
    %c0_3 = arith.constant 0 : index
    %0 = vector.load %arg1[%c0, %c0_0, %c0_1, %c0_2, %c0_3] : memref<1x1x5x5x8xbf16, #tpu.memory_space<vmem>>, vector<1x1x5x5x8xbf16>
    %c0_4 = arith.constant 0 : index
    %c0_5 = arith.constant 0 : index
    %c0_6 = arith.constant 0 : index
    %c0_7 = arith.constant 0 : index
    %c0_8 = arith.constant 0 : index
    %1 = vector.load %arg2[%c0_4, %c0_5, %c0_6, %c0_7, %c0_8] : memref<1x1x5x5x8xbf16, #tpu.memory_space<vmem>>, vector<1x1x5x5x8xbf16>
    %c0_9 = arith.constant 0 : index
    %c0_10 = arith.constant 0 : index
    %c0_11 = arith.constant 0 : index
    %c0_12 = arith.constant 0 : index
    %c0_13 = arith.constant 0 : index
    %2 = vector.load %arg3[%c0_9, %c0_10, %c0_11, %c0_12, %c0_13] : memref<1x1x5x5x8xbf16, #tpu.memory_space<vmem>>, vector<1x1x5x5x8xbf16>
    %c0_14 = arith.constant 0 : index
    %c0_15 = arith.constant 0 : index
    %c0_16 = arith.constant 0 : index
    %c0_17 = arith.constant 0 : index
    %c0_18 = arith.constant 0 : index
    %3 = vector.load %arg4[%c0_14, %c0_15, %c0_16, %c0_17, %c0_18] : memref<1x1x5x5x8xbf16, #tpu.memory_space<vmem>>, vector<1x1x5x5x8xbf16>
    %c0_19 = arith.constant 0 : index
    %c0_20 = arith.constant 0 : index
    %c0_21 = arith.constant 0 : index
    %c0_22 = arith.constant 0 : index
    %4 = vector.load %arg5[%c0_19, %c0_20, %c0_21, %c0_22] : memref<9x2x4x4xbf16, #tpu.memory_space<vmem>>, vector<9x2x4x4xbf16>
    %cst = arith.constant 0.000000e+00 : f32
    %5 = vector.broadcast %cst : f32 to vector<16x4xf32>
    %cst_23 = arith.constant 0.000000e+00 : f32
    %6 = vector.broadcast %cst_23 : f32 to vector<16x4xf32>
    %7 = vector.extract_strided_slice %0 {offsets = [0, 0, 0, 0, 0], sizes = [1, 1, 4, 4, 8], strides = [1, 1, 1, 1, 1]} : vector<1x1x5x5x8xbf16> to vector<1x1x4x4x8xbf16>
    %8 = vector.shape_cast %7 : vector<1x1x4x4x8xbf16> to vector<4x4x8xbf16>
    %9 = vector.shape_cast %8 : vector<4x4x8xbf16> to vector<16x8xbf16>
    %10 = vector.extract_strided_slice %9 {offsets = [0, 0], sizes = [16, 4], strides = [1, 1]} : vector<16x8xbf16> to vector<16x4xbf16>
    %11 = vector.extract_strided_slice %4 {offsets = [0, 0, 0, 0], sizes = [1, 1, 4, 4], strides = [1, 1, 1, 1]} : vector<9x2x4x4xbf16> to vector<1x1x4x4xbf16>
    %12 = vector.shape_cast %11 : vector<1x1x4x4xbf16> to vector<4x4xbf16>
    %cst_24 = arith.constant dense<0.000000e+00> : vector<16x4xf32>
    %13 = tpu.matmul %10, %12, %cst_24 {dimension_numbers = #tpu.dot_dimension_numbers<[1], [0], [0], [1], [0, 0, 1, 1], [], []>} : vector<16x4xbf16>, vector<4x4xbf16>, vector<16x4xf32> -> vector<16x4xf32>
    %14 = arith.addf %5, %13 : vector<16x4xf32>
    %15 = vector.extract_strided_slice %9 {offsets = [0, 4], sizes = [16, 4], strides = [1, 1]} : vector<16x8xbf16> to vector<16x4xbf16>
    %16 = vector.extract_strided_slice %4 {offsets = [0, 1, 0, 0], sizes = [1, 1, 4, 4], strides = [1, 1, 1, 1]} : vector<9x2x4x4xbf16> to vector<1x1x4x4xbf16>
    %17 = vector.shape_cast %16 : vector<1x1x4x4xbf16> to vector<4x4xbf16>
    %cst_25 = arith.constant dense<0.000000e+00> : vector<16x4xf32>
    %18 = tpu.matmul %15, %17, %cst_25 {dimension_numbers = #tpu.dot_dimension_numbers<[1], [0], [0], [1], [0, 0, 1, 1], [], []>} : vector<16x4xbf16>, vector<4x4xbf16>, vector<16x4xf32> -> vector<16x4xf32>
    %19 = arith.addf %6, %18 : vector<16x4xf32>
    %20 = vector.extract_strided_slice %1 {offsets = [0, 0, 0, 0, 0], sizes = [1, 1, 4, 4, 8], strides = [1, 1, 1, 1, 1]} : vector<1x1x5x5x8xbf16> to vector<1x1x4x4x8xbf16>
    %21 = vector.shape_cast %20 : vector<1x1x4x4x8xbf16> to vector<4x4x8xbf16>
    %22 = vector.shape_cast %21 : vector<4x4x8xbf16> to vector<16x8xbf16>
    %23 = vector.extract_strided_slice %22 {offsets = [0, 0], sizes = [16, 4], strides = [1, 1]} : vector<16x8xbf16> to vector<16x4xbf16>
    %24 = vector.extract_strided_slice %4 {offsets = [1, 0, 0, 0], sizes = [1, 1, 4, 4], strides = [1, 1, 1, 1]} : vector<9x2x4x4xbf16> to vector<1x1x4x4xbf16>
    %25 = vector.shape_cast %24 : vector<1x1x4x4xbf16> to vector<4x4xbf16>
    %cst_26 = arith.constant dense<0.000000e+00> : vector<16x4xf32>
    %26 = tpu.matmul %23, %25, %cst_26 {dimension_numbers = #tpu.dot_dimension_numbers<[1], [0], [0], [1], [0, 0, 1, 1], [], []>} : vector<16x4xbf16>, vector<4x4xbf16>, vector<16x4xf32> -> vector<16x4xf32>
    %27 = arith.addf %14, %26 : vector<16x4xf32>
    %28 = vector.extract_strided_slice %22 {offsets = [0, 4], sizes = [16, 4], strides = [1, 1]} : vector<16x8xbf16> to vector<16x4xbf16>
    %29 = vector.extract_strided_slice %4 {offsets = [1, 1, 0, 0], sizes = [1, 1, 4, 4], strides = [1, 1, 1, 1]} : vector<9x2x4x4xbf16> to vector<1x1x4x4xbf16>
    %30 = vector.shape_cast %29 : vector<1x1x4x4xbf16> to vector<4x4xbf16>
    %cst_27 = arith.constant dense<0.000000e+00> : vector<16x4xf32>
    %31 = tpu.matmul %28, %30, %cst_27 {dimension_numbers = #tpu.dot_dimension_numbers<[1], [0], [0], [1], [0, 0, 1, 1], [], []>} : vector<16x4xbf16>, vector<4x4xbf16>, vector<16x4xf32> -> vector<16x4xf32>
    %32 = arith.addf %19, %31 : vector<16x4xf32>
    %33 = vector.extract_strided_slice %0 {offsets = [0, 0, 0, 1, 0], sizes = [1, 1, 4, 4, 8], strides = [1, 1, 1, 1, 1]} : vector<1x1x5x5x8xbf16> to vector<1x1x4x4x8xbf16>
    %34 = vector.shape_cast %33 : vector<1x1x4x4x8xbf16> to vector<4x4x8xbf16>
    %35 = vector.shape_cast %34 : vector<4x4x8xbf16> to vector<16x8xbf16>
    %36 = vector.extract_strided_slice %35 {offsets = [0, 0], sizes = [16, 4], strides = [1, 1]} : vector<16x8xbf16> to vector<16x4xbf16>
    %37 = vector.extract_strided_slice %4 {offsets = [2, 0, 0, 0], sizes = [1, 1, 4, 4], strides = [1, 1, 1, 1]} : vector<9x2x4x4xbf16> to vector<1x1x4x4xbf16>
    %38 = vector.shape_cast %37 : vector<1x1x4x4xbf16> to vector<4x4xbf16>
    %cst_28 = arith.constant dense<0.000000e+00> : vector<16x4xf32>
    %39 = tpu.matmul %36, %38, %cst_28 {dimension_numbers = #tpu.dot_dimension_numbers<[1], [0], [0], [1], [0, 0, 1, 1], [], []>} : vector<16x4xbf16>, vector<4x4xbf16>, vector<16x4xf32> -> vector<16x4xf32>
    %40 = arith.addf %27, %39 : vector<16x4xf32>
    %41 = vector.extract_strided_slice %35 {offsets = [0, 4], sizes = [16, 4], strides = [1, 1]} : vector<16x8xbf16> to vector<16x4xbf16>
    %42 = vector.extract_strided_slice %4 {offsets = [2, 1, 0, 0], sizes = [1, 1, 4, 4], strides = [1, 1, 1, 1]} : vector<9x2x4x4xbf16> to vector<1x1x4x4xbf16>
    %43 = vector.shape_cast %42 : vector<1x1x4x4xbf16> to vector<4x4xbf16>
    %cst_29 = arith.constant dense<0.000000e+00> : vector<16x4xf32>
    %44 = tpu.matmul %41, %43, %cst_29 {dimension_numbers = #tpu.dot_dimension_numbers<[1], [0], [0], [1], [0, 0, 1, 1], [], []>} : vector<16x4xbf16>, vector<4x4xbf16>, vector<16x4xf32> -> vector<16x4xf32>
    %45 = arith.addf %32, %44 : vector<16x4xf32>
    %46 = vector.extract_strided_slice %2 {offsets = [0, 0, 0, 0, 0], sizes = [1, 1, 4, 4, 8], strides = [1, 1, 1, 1, 1]} : vector<1x1x5x5x8xbf16> to vector<1x1x4x4x8xbf16>
    %47 = vector.shape_cast %46 : vector<1x1x4x4x8xbf16> to vector<4x4x8xbf16>
    %48 = vector.shape_cast %47 : vector<4x4x8xbf16> to vector<16x8xbf16>
    %49 = vector.extract_strided_slice %48 {offsets = [0, 0], sizes = [16, 4], strides = [1, 1]} : vector<16x8xbf16> to vector<16x4xbf16>
    %50 = vector.extract_strided_slice %4 {offsets = [3, 0, 0, 0], sizes = [1, 1, 4, 4], strides = [1, 1, 1, 1]} : vector<9x2x4x4xbf16> to vector<1x1x4x4xbf16>
    %51 = vector.shape_cast %50 : vector<1x1x4x4xbf16> to vector<4x4xbf16>
    %cst_30 = arith.constant dense<0.000000e+00> : vector<16x4xf32>
    %52 = tpu.matmul %49, %51, %cst_30 {dimension_numbers = #tpu.dot_dimension_numbers<[1], [0], [0], [1], [0, 0, 1, 1], [], []>} : vector<16x4xbf16>, vector<4x4xbf16>, vector<16x4xf32> -> vector<16x4xf32>
    %53 = arith.addf %40, %52 : vector<16x4xf32>
    %54 = vector.extract_strided_slice %48 {offsets = [0, 4], sizes = [16, 4], strides = [1, 1]} : vector<16x8xbf16> to vector<16x4xbf16>
    %55 = vector.extract_strided_slice %4 {offsets = [3, 1, 0, 0], sizes = [1, 1, 4, 4], strides = [1, 1, 1, 1]} : vector<9x2x4x4xbf16> to vector<1x1x4x4xbf16>
    %56 = vector.shape_cast %55 : vector<1x1x4x4xbf16> to vector<4x4xbf16>
    %cst_31 = arith.constant dense<0.000000e+00> : vector<16x4xf32>
    %57 = tpu.matmul %54, %56, %cst_31 {dimension_numbers = #tpu.dot_dimension_numbers<[1], [0], [0], [1], [0, 0, 1, 1], [], []>} : vector<16x4xbf16>, vector<4x4xbf16>, vector<16x4xf32> -> vector<16x4xf32>
    %58 = arith.addf %45, %57 : vector<16x4xf32>
    %59 = vector.extract_strided_slice %3 {offsets = [0, 0, 0, 0, 0], sizes = [1, 1, 4, 4, 8], strides = [1, 1, 1, 1, 1]} : vector<1x1x5x5x8xbf16> to vector<1x1x4x4x8xbf16>
    %60 = vector.shape_cast %59 : vector<1x1x4x4x8xbf16> to vector<4x4x8xbf16>
    %61 = vector.shape_cast %60 : vector<4x4x8xbf16> to vector<16x8xbf16>
    %62 = vector.extract_strided_slice %61 {offsets = [0, 0], sizes = [16, 4], strides = [1, 1]} : vector<16x8xbf16> to vector<16x4xbf16>
    %63 = vector.extract_strided_slice %4 {offsets = [4, 0, 0, 0], sizes = [1, 1, 4, 4], strides = [1, 1, 1, 1]} : vector<9x2x4x4xbf16> to vector<1x1x4x4xbf16>
    %64 = vector.shape_cast %63 : vector<1x1x4x4xbf16> to vector<4x4xbf16>
    %cst_32 = arith.constant dense<0.000000e+00> : vector<16x4xf32>
    %65 = tpu.matmul %62, %64, %cst_32 {dimension_numbers = #tpu.dot_dimension_numbers<[1], [0], [0], [1], [0, 0, 1, 1], [], []>} : vector<16x4xbf16>, vector<4x4xbf16>, vector<16x4xf32> -> vector<16x4xf32>
    %66 = arith.addf %53, %65 : vector<16x4xf32>
    %67 = vector.extract_strided_slice %61 {offsets = [0, 4], sizes = [16, 4], strides = [1, 1]} : vector<16x8xbf16> to vector<16x4xbf16>
    %68 = vector.extract_strided_slice %4 {offsets = [4, 1, 0, 0], sizes = [1, 1, 4, 4], strides = [1, 1, 1, 1]} : vector<9x2x4x4xbf16> to vector<1x1x4x4xbf16>
    %69 = vector.shape_cast %68 : vector<1x1x4x4xbf16> to vector<4x4xbf16>
    %cst_33 = arith.constant dense<0.000000e+00> : vector<16x4xf32>
    %70 = tpu.matmul %67, %69, %cst_33 {dimension_numbers = #tpu.dot_dimension_numbers<[1], [0], [0], [1], [0, 0, 1, 1], [], []>} : vector<16x4xbf16>, vector<4x4xbf16>, vector<16x4xf32> -> vector<16x4xf32>
    %71 = arith.addf %58, %70 : vector<16x4xf32>
    %72 = vector.extract_strided_slice %2 {offsets = [0, 0, 0, 1, 0], sizes = [1, 1, 4, 4, 8], strides = [1, 1, 1, 1, 1]} : vector<1x1x5x5x8xbf16> to vector<1x1x4x4x8xbf16>
    %73 = vector.shape_cast %72 : vector<1x1x4x4x8xbf16> to vector<4x4x8xbf16>
    %74 = vector.shape_cast %73 : vector<4x4x8xbf16> to vector<16x8xbf16>
    %75 = vector.extract_strided_slice %74 {offsets = [0, 0], sizes = [16, 4], strides = [1, 1]} : vector<16x8xbf16> to vector<16x4xbf16>
    %76 = vector.extract_strided_slice %4 {offsets = [5, 0, 0, 0], sizes = [1, 1, 4, 4], strides = [1, 1, 1, 1]} : vector<9x2x4x4xbf16> to vector<1x1x4x4xbf16>
    %77 = vector.shape_cast %76 : vector<1x1x4x4xbf16> to vector<4x4xbf16>
    %cst_34 = arith.constant dense<0.000000e+00> : vector<16x4xf32>
    %78 = tpu.matmul %75, %77, %cst_34 {dimension_numbers = #tpu.dot_dimension_numbers<[1], [0], [0], [1], [0, 0, 1, 1], [], []>} : vector<16x4xbf16>, vector<4x4xbf16>, vector<16x4xf32> -> vector<16x4xf32>
    %79 = arith.addf %66, %78 : vector<16x4xf32>
    %80 = vector.extract_strided_slice %74 {offsets = [0, 4], sizes = [16, 4], strides = [1, 1]} : vector<16x8xbf16> to vector<16x4xbf16>
    %81 = vector.extract_strided_slice %4 {offsets = [5, 1, 0, 0], sizes = [1, 1, 4, 4], strides = [1, 1, 1, 1]} : vector<9x2x4x4xbf16> to vector<1x1x4x4xbf16>
    %82 = vector.shape_cast %81 : vector<1x1x4x4xbf16> to vector<4x4xbf16>
    %cst_35 = arith.constant dense<0.000000e+00> : vector<16x4xf32>
    %83 = tpu.matmul %80, %82, %cst_35 {dimension_numbers = #tpu.dot_dimension_numbers<[1], [0], [0], [1], [0, 0, 1, 1], [], []>} : vector<16x4xbf16>, vector<4x4xbf16>, vector<16x4xf32> -> vector<16x4xf32>
    %84 = arith.addf %71, %83 : vector<16x4xf32>
    %85 = vector.extract_strided_slice %0 {offsets = [0, 0, 1, 0, 0], sizes = [1, 1, 4, 4, 8], strides = [1, 1, 1, 1, 1]} : vector<1x1x5x5x8xbf16> to vector<1x1x4x4x8xbf16>
    %86 = vector.shape_cast %85 : vector<1x1x4x4x8xbf16> to vector<4x4x8xbf16>
    %87 = vector.shape_cast %86 : vector<4x4x8xbf16> to vector<16x8xbf16>
    %88 = vector.extract_strided_slice %87 {offsets = [0, 0], sizes = [16, 4], strides = [1, 1]} : vector<16x8xbf16> to vector<16x4xbf16>
    %89 = vector.extract_strided_slice %4 {offsets = [6, 0, 0, 0], sizes = [1, 1, 4, 4], strides = [1, 1, 1, 1]} : vector<9x2x4x4xbf16> to vector<1x1x4x4xbf16>
    %90 = vector.shape_cast %89 : vector<1x1x4x4xbf16> to vector<4x4xbf16>
    %cst_36 = arith.constant dense<0.000000e+00> : vector<16x4xf32>
    %91 = tpu.matmul %88, %90, %cst_36 {dimension_numbers = #tpu.dot_dimension_numbers<[1], [0], [0], [1], [0, 0, 1, 1], [], []>} : vector<16x4xbf16>, vector<4x4xbf16>, vector<16x4xf32> -> vector<16x4xf32>
    %92 = arith.addf %79, %91 : vector<16x4xf32>
    %93 = vector.extract_strided_slice %87 {offsets = [0, 4], sizes = [16, 4], strides = [1, 1]} : vector<16x8xbf16> to vector<16x4xbf16>
    %94 = vector.extract_strided_slice %4 {offsets = [6, 1, 0, 0], sizes = [1, 1, 4, 4], strides = [1, 1, 1, 1]} : vector<9x2x4x4xbf16> to vector<1x1x4x4xbf16>
    %95 = vector.shape_cast %94 : vector<1x1x4x4xbf16> to vector<4x4xbf16>
    %cst_37 = arith.constant dense<0.000000e+00> : vector<16x4xf32>
    %96 = tpu.matmul %93, %95, %cst_37 {dimension_numbers = #tpu.dot_dimension_numbers<[1], [0], [0], [1], [0, 0, 1, 1], [], []>} : vector<16x4xbf16>, vector<4x4xbf16>, vector<16x4xf32> -> vector<16x4xf32>
    %97 = arith.addf %84, %96 : vector<16x4xf32>
    %98 = vector.extract_strided_slice %1 {offsets = [0, 0, 1, 0, 0], sizes = [1, 1, 4, 4, 8], strides = [1, 1, 1, 1, 1]} : vector<1x1x5x5x8xbf16> to vector<1x1x4x4x8xbf16>
    %99 = vector.shape_cast %98 : vector<1x1x4x4x8xbf16> to vector<4x4x8xbf16>
    %100 = vector.shape_cast %99 : vector<4x4x8xbf16> to vector<16x8xbf16>
    %101 = vector.extract_strided_slice %100 {offsets = [0, 0], sizes = [16, 4], strides = [1, 1]} : vector<16x8xbf16> to vector<16x4xbf16>
    %102 = vector.extract_strided_slice %4 {offsets = [7, 0, 0, 0], sizes = [1, 1, 4, 4], strides = [1, 1, 1, 1]} : vector<9x2x4x4xbf16> to vector<1x1x4x4xbf16>
    %103 = vector.shape_cast %102 : vector<1x1x4x4xbf16> to vector<4x4xbf16>
    %cst_38 = arith.constant dense<0.000000e+00> : vector<16x4xf32>
    %104 = tpu.matmul %101, %103, %cst_38 {dimension_numbers = #tpu.dot_dimension_numbers<[1], [0], [0], [1], [0, 0, 1, 1], [], []>} : vector<16x4xbf16>, vector<4x4xbf16>, vector<16x4xf32> -> vector<16x4xf32>
    %105 = arith.addf %92, %104 : vector<16x4xf32>
    %106 = vector.extract_strided_slice %100 {offsets = [0, 4], sizes = [16, 4], strides = [1, 1]} : vector<16x8xbf16> to vector<16x4xbf16>
    %107 = vector.extract_strided_slice %4 {offsets = [7, 1, 0, 0], sizes = [1, 1, 4, 4], strides = [1, 1, 1, 1]} : vector<9x2x4x4xbf16> to vector<1x1x4x4xbf16>
    %108 = vector.shape_cast %107 : vector<1x1x4x4xbf16> to vector<4x4xbf16>
    %cst_39 = arith.constant dense<0.000000e+00> : vector<16x4xf32>
    %109 = tpu.matmul %106, %108, %cst_39 {dimension_numbers = #tpu.dot_dimension_numbers<[1], [0], [0], [1], [0, 0, 1, 1], [], []>} : vector<16x4xbf16>, vector<4x4xbf16>, vector<16x4xf32> -> vector<16x4xf32>
    %110 = arith.addf %97, %109 : vector<16x4xf32>
    %111 = vector.extract_strided_slice %0 {offsets = [0, 0, 1, 1, 0], sizes = [1, 1, 4, 4, 8], strides = [1, 1, 1, 1, 1]} : vector<1x1x5x5x8xbf16> to vector<1x1x4x4x8xbf16>
    %112 = vector.shape_cast %111 : vector<1x1x4x4x8xbf16> to vector<4x4x8xbf16>
    %113 = vector.shape_cast %112 : vector<4x4x8xbf16> to vector<16x8xbf16>
    %114 = vector.extract_strided_slice %113 {offsets = [0, 0], sizes = [16, 4], strides = [1, 1]} : vector<16x8xbf16> to vector<16x4xbf16>
    %115 = vector.extract_strided_slice %4 {offsets = [8, 0, 0, 0], sizes = [1, 1, 4, 4], strides = [1, 1, 1, 1]} : vector<9x2x4x4xbf16> to vector<1x1x4x4xbf16>
    %116 = vector.shape_cast %115 : vector<1x1x4x4xbf16> to vector<4x4xbf16>
    %cst_40 = arith.constant dense<0.000000e+00> : vector<16x4xf32>
    %117 = tpu.matmul %114, %116, %cst_40 {dimension_numbers = #tpu.dot_dimension_numbers<[1], [0], [0], [1], [0, 0, 1, 1], [], []>} : vector<16x4xbf16>, vector<4x4xbf16>, vector<16x4xf32> -> vector<16x4xf32>
    %118 = arith.addf %105, %117 : vector<16x4xf32>
    %119 = vector.extract_strided_slice %113 {offsets = [0, 4], sizes = [16, 4], strides = [1, 1]} : vector<16x8xbf16> to vector<16x4xbf16>
    %120 = vector.extract_strided_slice %4 {offsets = [8, 1, 0, 0], sizes = [1, 1, 4, 4], strides = [1, 1, 1, 1]} : vector<9x2x4x4xbf16> to vector<1x1x4x4xbf16>
    %121 = vector.shape_cast %120 : vector<1x1x4x4xbf16> to vector<4x4xbf16>
    %cst_41 = arith.constant dense<0.000000e+00> : vector<16x4xf32>
    %122 = tpu.matmul %119, %121, %cst_41 {dimension_numbers = #tpu.dot_dimension_numbers<[1], [0], [0], [1], [0, 0, 1, 1], [], []>} : vector<16x4xbf16>, vector<4x4xbf16>, vector<16x4xf32> -> vector<16x4xf32>
    %123 = arith.addf %110, %122 : vector<16x4xf32>
    %124 = tpu.concatenate %118, %123 in 1 : vector<16x4xf32>, vector<16x4xf32> -> vector<16x8xf32>
    %c0_42 = arith.constant 0 : index
    %c0_43 = arith.constant 0 : index
    %125 = vector.load %arg6[%c0_42, %c0_43] : memref<1x8xf32, #tpu.memory_space<vmem>>, vector<1x8xf32>
    %126 = vector.broadcast %125 : vector<1x8xf32> to vector<16x8xf32>
    %127 = arith.addf %124, %126 : vector<16x8xf32>
    %cst_44 = arith.constant 0.000000e+00 : f32
    %128 = vector.broadcast %cst_44 : f32 to vector<16x8xf32>
    %129 = arith.maximumf %127, %128 : vector<16x8xf32>
    %130 = vector.shape_cast %129 : vector<16x8xf32> to vector<1x16x8xf32>
    %131 = arith.truncf %130 : vector<1x16x8xf32> to vector<1x16x8xbf16>
    %c0_45 = arith.constant 0 : index
    %c0_46 = arith.constant 0 : index
    %c0_47 = arith.constant 0 : index
    %132 = vector.load %arg7[%c0_45, %c0_46, %c0_47] : memref<1x16x8xbf16, #tpu.memory_space<vmem>>, vector<1x16x8xbf16>
    tpu.vector_store %arg7[%c0_45, %c0_46, %c0_47], %131 {strides = array<i32>} : memref<1x16x8xbf16, #tpu.memory_space<vmem>>, vector<1x16x8xbf16>,
    return
  }
  func.func @transform_0(%arg0: i32) -> (i32, i32, i32, i32, i32) {
    %c0_i32 = arith.constant 0 : i32
    %c0_i32_0 = arith.constant 0 : i32
    %c0_i32_1 = arith.constant 0 : i32
    %c0_i32_2 = arith.constant 0 : i32
    %c0_i32_3 = arith.constant 0 : i32
    return %arg0, %c0_i32, %c0_i32_0, %c0_i32_1, %c0_i32_2 : i32, i32, i32, i32, i32
  }
  func.func @transform_1(%arg0: i32) -> (i32, i32, i32, i32, i32) {
    %c0_i32 = arith.constant 0 : i32
    %c0_i32_0 = arith.constant 0 : i32
    %c0_i32_1 = arith.constant 0 : i32
    %c0_i32_2 = arith.constant 0 : i32
    %c0_i32_3 = arith.constant 0 : i32
    return %arg0, %c0_i32, %c0_i32_0, %c0_i32_1, %c0_i32_2 : i32, i32, i32, i32, i32
  }
  func.func @transform_2(%arg0: i32) -> (i32, i32, i32, i32, i32) {
    %c0_i32 = arith.constant 0 : i32
    %c0_i32_0 = arith.constant 0 : i32
    %c0_i32_1 = arith.constant 0 : i32
    %c0_i32_2 = arith.constant 0 : i32
    %c0_i32_3 = arith.constant 0 : i32
    return %arg0, %c0_i32, %c0_i32_0, %c0_i32_1, %c0_i32_2 : i32, i32, i32, i32, i32
  }
  func.func @transform_3(%arg0: i32) -> (i32, i32, i32, i32, i32) {
    %c0_i32 = arith.constant 0 : i32
    %c0_i32_0 = arith.constant 0 : i32
    %c0_i32_1 = arith.constant 0 : i32
    %c0_i32_2 = arith.constant 0 : i32
    %c0_i32_3 = arith.constant 0 : i32
    return %arg0, %c0_i32, %c0_i32_0, %c0_i32_1, %c0_i32_2 : i32, i32, i32, i32, i32
  }
  func.func @transform_4(%arg0: i32) -> (i32, i32, i32, i32) {
    %c0_i32 = arith.constant 0 : i32
    %c0_i32_0 = arith.constant 0 : i32
    %c0_i32_1 = arith.constant 0 : i32
    %c0_i32_2 = arith.constant 0 : i32
    %c0_i32_3 = arith.constant 0 : i32
    return %c0_i32, %c0_i32_0, %c0_i32_1, %c0_i32_2 : i32, i32, i32, i32
  }
  func.func @transform_5(%arg0: i32) -> (i32, i32) {
    %c0_i32 = arith.constant 0 : i32
    %c0_i32_0 = arith.constant 0 : i32
    %c0_i32_1 = arith.constant 0 : i32
    return %c0_i32, %c0_i32_0 : i32, i32
  }
  func.func @transform_6(%arg0: i32) -> (i32, i32, i32) {
    %c0_i32 = arith.constant 0 : i32
    %c0_i32_0 = arith.constant 0 : i32
    %c0_i32_1 = arith.constant 0 : i32
    return %arg0, %c0_i32, %c0_i32_0 : i32, i32, i32
  }
}

</mosaic_0001>

<bundles_post_ra>
// kernel: res_block_forward.6
= control target key start
LH: loop header
LB: loop body
LE: loop exit
PB: predicated region body
PF: predicated region fallthrough
CT: control target
= control target key end

     0   :  { %vm77_vm0 = vcmask 1043456   ;;  %vm64_vm1 = vcmask 64512   ;;  %s353_s1 = inlined_call_operand.vmem [shape: bf16[8,128], index: 1, kind: input, shape index: {}]   ;;  %s354_s0 = inlined_call_operand.vmem [shape: bf16[64,8], index: 0, kind: input, shape index: {}]   ;;  %s355_s2 = inlined_call_operand.vmem [shape: f32[1,128], index: 2, kind: input, shape index: {}]   ;;  %s356_s3 = inlined_call_operand.vmem [shape: bf16[64,128], index: 3, kind: output, shape index: {}]  }
   0x1   :  { %v43_v0 = vld [vmem:[%s353_s1] sm:$0xf]  ;;  %v300_v3 = vld [vmem:[%s354_s0 + $0x10] sm:$0xff]   ;;  %v301_v4 = vld [vmem:[%s354_s0 + $0x8] sm:$0xff]  }
   0x2   :  { %297 = vmatprep.subr.msk.bf16.mxu0 %vm77_vm0, %v43_v0  ;;  %298 = vmatprep.subr.msk.bf16.mxu1 %vm77_vm0, %v43_v0  ;;  %v79_v1 = vsel %vm77_vm0, %v43_v0, 0  ;;  %v299_v2 = vld [vmem:[%s354_s0] sm:$0xff]   ;;  %v302_v5 = vld [vmem:[%s354_s0 + $0x18] sm:$0xff]  }
   0x3   :  { %286 = vmatpush3.bf16.msra.mxu0 %v79_v1  ;;  %296 = vmatpush3.bf16.msra.mxu1 %v79_v1  ;;  %v240_v8 = vld [vmem:[%s355_s2] ss:$0 sm:$0xff] }
   0x4   :  { %287 = vmatprep.mubr.msk.bf16.mxu0 %vm64_vm1, %v299_v2  ;;  %291 = vmatprep.mubr.msk.bf16.mxu1 %vm64_vm1, %v300_v3 }
   0x6   :  { %288 = vmatmul.mubr.msk.bf16.vlgmr.msra.gmra.mxu0 %vm64_vm1, %v301_v4  ;;  %292 = vmatmul.mubr.msk.bf16.vlgmr.msra.gmra.mxu1 %vm64_vm1, %v302_v5 }
  0xc6   :  { %v289_v6 = vpop.f32.mrf.mxu0  ;;  %v293_v7 = vpop.f32.mrf.mxu1 }
  0xc7   :  { %v182_v12 = vadd.f32 %v289_v6, %v240_v8  ;;  %v186_v15 = vadd.f32 %v293_v7, %v240_v8 }
  0xc8   :  { %v115_v9 = vpop.f32.mrf.mxu0  ;;  %v131_v10 = vpop.f32.mrf.mxu1 }
  0xc9   :  { %v180_v18 = vadd.f32 %v240_v8, %v115_v9  ;;  %v184_v22 = vadd.f32 %v240_v8, %v131_v10 }
  0xca   :  { %v290_v11 = vpop.f32.mrf.mxu0  ;;  %v294_v14 = vpop.f32.mrf.mxu1 }
  0xcb   :  { %v183_v13 = vadd.f32 %v290_v11, %v240_v8  ;;  %v187_v16 = vadd.f32 %v294_v14, %v240_v8 }
  0xcc   :  { %v118_v17 = vpop.f32.mrf.mxu0  ;;  %v134_v21 = vpop.f32.mrf.mxu1 }
  0xcd   :  { %v265_v19 = vpack.c.bf16 %v183_v13, %v182_v12  ;;  %v181_v20 = vadd.f32 %v240_v8, %v118_v17  ;;  %v275_v23 = vpack.c.bf16 %v187_v16, %v186_v15  ;;  %v185_v24 = vadd.f32 %v240_v8, %v134_v21 }
  0xcf   :  { %277 = vst [vmem:[%s356_s3 + $0x8] sm:$0xff] %v265_v19   ;;  %v260_v25 = vpack.c.bf16 %v181_v20, %v180_v18  ;;  %279 = vst [vmem:[%s356_s3 + $0x18] sm:$0xff] %v275_v23   ;;  %v270_v26 = vpack.c.bf16 %v185_v24, %v184_v22 }
  0xd1   :  { %261 = vst [vmem:[%s356_s3] sm:$0xff] %v260_v25   ;;  %278 = vst [vmem:[%s356_s3 + $0x10] sm:$0xff] %v270_v26  }

// kernel: res_block_forward.4
= control target key start
LH: loop header
LB: loop body
LE: loop exit
PB: predicated region body
PF: predicated region fallthrough
CT: control target
= control target key end

     0   :  { %s1460_s12 = smov 0   ;;  %s1462_s13 = smov 0   ;;  %s1595_s0 = inlined_call_operand.vmem [shape: bf16[512,24], index: 0, kind: input, shape index: {}]   ;;  %s1596_s1 = inlined_call_operand.vmem [shape: bf16[24,128], index: 1, kind: input, shape index: {}]   ;;  %s1597_s2 = inlined_call_operand.vmem [shape: f32[1,128], index: 2, kind: input, shape index: {}]   ;;  %s1598_s3 = inlined_call_operand.vmem [shape: bf16[512,128], index: 3, kind: output, shape index: {}]  }
   0x1   :  { %s1464_s14 = smov 0  }
   0x2 LB: > { %s32_s15 = sadd.s32 1, %s1434_s13  ;;  %p1113_p0 = scmp.ge.s32.totalorder %s1438_s14, 1  ;;  %s1438_s14 = sphi %s1464_s14, %s13_s14   ;;  %s1434_s13 = sphi %s1462_s13, %s1600_s13   ;;  %s1430_s12 = sphi %s1460_s12, %s1599_s12  }
   0x3   : > { %p34_p1 = scmp.ge.s32.totalorder %s32_s15, 2  ;;  %p188_p2 = scmp.lt.s32.totalorder %s1438_s14, 3 }
   0x5   : > { %s1602_s15 = smov (%p34_p1, %s32_s15), 0  ;;  %p189_p3 = pnand %p1113_p0, %p188_p2 }
   0x6   : > { %s1114_s20 = sshll.u32 (!%p189_p3), %s1430_s12, 5 }
   0x7   : > { %192 = sbr.rel (%p189_p3) target bundleno = 251 (0xfb), region = 32  ;;  %p230_p4 = scmp.lt.s32.totalorder (!%p189_p3), %s1114_s20, 63 }
   0xc   : > { %v1398_v0 = vld [vmem:[%s1596_s1 + $0x8] ss:$0 sps:$4 sm:$0xff]   ;;  %vm501_vm0 = vcmask 1043456   ;;  %v1399_v1 = vld [vmem:[%s1596_s1] sm:$0xff]   ;;  %s1604_s20 = smov (!%p230_p4, %s1114_s20), 63  ;;  %vm452_vm1 = vcmask 195584  }
   0xd   : > { %1372 = vmatprep.subr.msk.bf16.mxu0 %vm501_vm0, %v1398_v0  ;;  %1373 = vmatprep.subr.msk.bf16.mxu1 %vm501_vm0, %v1398_v0  ;;  %v503_v2 = vsel %vm501_vm0, %v1398_v0, 0  ;;  %s1115_s21 = sshll.u32 %s1604_s20, 2  ;;  %v1529_v20 = vld [vmem:[%s1597_s2] ss:$0 sm:$0xff] }
   0xe   : > { %1333 = vmatpush3.bf16.msra.mxu0 %v503_v2  ;;  %1370 = vmatpush3.bf16.msra.mxu1 %v503_v2  ;;  %s1492_s24 = scalar_lea.vmem %s1595_s0, %s1115_s21  ;;  %s1543_s29 = scalar_lea.vmem %s1598_s3, %s1115_s21 }
   0xf   : > { %1334 = vmatprep.subr.bf16.mxu0 %v1399_v1  ;;  %1369 = vmatprep.subr.bf16.mxu1 %v1399_v1  ;;  %v1400_v3 = vld [vmem:[%s1492_s24] sm:$0xff]   ;;  %v1402_v5 = vld [vmem:[%s1492_s24 + $0x8] sm:$0xff]   ;;  %v1404_v7 = vld [vmem:[%s1492_s24 + $0x10] sm:$0xff]  }
  0x10   : > { %v1401_v4 = vld [vmem:[%s1492_s24 + $0x40] sm:$0xff]   ;;  %1336 = vmatprep.mubr.msk.bf16.mxu0 %vm452_vm1, %v1400_v3  ;;  %v1403_v6 = vld [vmem:[%s1492_s24 + $0x48] sm:$0xff]   ;;  %v1405_v8 = vld [vmem:[%s1492_s24 + $0x50] sm:$0xff]  }
  0x11   : > { %1352 = vmatprep.mubr.msk.bf16.mxu1 %vm452_vm1, %v1401_v4  ;;  %v1406_v9 = vld [vmem:[%s1492_s24 + $0x18] sm:$0xff]   ;;  %v1408_v11 = vld [vmem:[%s1492_s24 + $0x20] sm:$0xff]   ;;  %v1410_v13 = vld [vmem:[%s1492_s24 + $0x28] sm:$0xff]  }
  0x12   : > { %1335 = vmatpush3.bf16.msra.mxu0 %v1399_v1  ;;  %1371 = vmatpush3.bf16.msra.mxu1 %v1399_v1  ;;  %v1407_v10 = vld [vmem:[%s1492_s24 + $0x58] sm:$0xff]   ;;  %v1409_v12 = vld [vmem:[%s1492_s24 + $0x60] sm:$0xff]   ;;  %v1411_v14 = vld [vmem:[%s1492_s24 + $0x68] sm:$0xff]  }
  0x13   : > { %v1412_v15 = vld [vmem:[%s1492_s24 + $0x30] sm:$0xff]   ;;  %v1414_v17 = vld [vmem:[%s1492_s24 + $0x38] sm:$0xff]  }
  0x14   : > { %v1413_v16 = vld [vmem:[%s1492_s24 + $0x70] sm:$0xff]   ;;  %v1415_v18 = vld [vmem:[%s1492_s24 + $0x78] sm:$0xff]  }
  0x15   : > { %1337 = vmatmul.mubr.msk.bf16.vlgmr.msra.gmra.mxu0 %vm452_vm1, %v1402_v5  ;;  %1353 = vmatmul.mubr.msk.bf16.vlgmr.msra.gmra.mxu1 %vm452_vm1, %v1403_v6 }
  0x16   : > { %1340 = vmatprep.mubr.msk.bf16.mxu0 %vm452_vm1, %v1404_v7  ;;  %1356 = vmatprep.mubr.msk.bf16.mxu1 %vm452_vm1, %v1405_v8 }
  0x1d   : > { %1341 = vmatmul.mubr.msk.bf16.gmra.mxu0 %vm452_vm1, %v1406_v9  ;;  %1357 = vmatmul.mubr.msk.bf16.gmra.mxu1 %vm452_vm1, %v1407_v10 }
  0x1e   : > { %1344 = vmatprep.mubr.msk.bf16.mxu0 %vm452_vm1, %v1408_v11  ;;  %1360 = vmatprep.mubr.msk.bf16.mxu1 %vm452_vm1, %v1409_v12 }
  0x25   : > { %1345 = vmatmul.mubr.msk.bf16.gmra.mxu0 %vm452_vm1, %v1410_v13  ;;  %1361 = vmatmul.mubr.msk.bf16.gmra.mxu1 %vm452_vm1, %v1411_v14 }
  0x26   : > { %1348 = vmatprep.mubr.msk.bf16.mxu0 %vm452_vm1, %v1412_v15  ;;  %1364 = vmatprep.mubr.msk.bf16.mxu1 %vm452_vm1, %v1413_v16 }
  0x2d   : > { %1349 = vmatmul.mubr.msk.bf16.gmra.mxu0 %vm452_vm1, %v1414_v17  ;;  %1365 = vmatmul.mubr.msk.bf16.gmra.mxu1 %vm452_vm1, %v1415_v18 }
  0xd5   : > { %v1338_v19 = vpop.f32.mrf.mxu0  ;;  %v1354_v21 = vpop.f32.mrf.mxu1 }
  0xd6   : > { %v774_v23 = vadd.f32 %v1338_v19, %v1529_v20  ;;  %v790_v25 = vadd.f32 %v1354_v21, %v1529_v20 }
  0xd7   : > { %v539_v22 = vpop.f32.mrf.mxu0  ;;  %v603_v24 = vpop.f32.mrf.mxu1 }
  0xd8   : > { %v772_v27 = vadd.f32 %v1529_v20, %v539_v22  ;;  %v788_v30 = vadd.f32 %v1529_v20, %v603_v24  ;;  %v806_v33 = vmax.f32 %v774_v23, 0.0  ;;  %v822_v37 = vmax.f32 %v790_v25, 0.0 }
  0xd9   : > { %v1339_v26 = vpop.f32.mrf.mxu0  ;;  %v1355_v29 = vpop.f32.mrf.mxu1 }
  0xda   : > { %v775_v28 = vadd.f32 %v1339_v26, %v1529_v20  ;;  %v791_v31 = vadd.f32 %v1355_v29, %v1529_v20  ;;  %v804_v41 = vmax.f32 %v772_v27, 0.0  ;;  %v820_v45 = vmax.f32 %v788_v30, 0.0 }
  0xdb   : > { %v542_v32 = vpop.f32.mrf.mxu0  ;;  %v606_v36 = vpop.f32.mrf.mxu1 }
  0xdc   : > { %v807_v34 = vmax.f32 %v775_v28, 0.0  ;;  %v773_v35 = vadd.f32 %v1529_v20, %v542_v32  ;;  %v823_v38 = vmax.f32 %v791_v31, 0.0  ;;  %v789_v39 = vadd.f32 %v1529_v20, %v606_v36 }
  0xdd   : > { %v1342_v40 = vpop.f32.mrf.mxu0  ;;  %v1358_v44 = vpop.f32.mrf.mxu1 }
  0xde   : > { %v1227_v42 = vpack.c.bf16 %v807_v34, %v806_v33  ;;  %v805_v43 = vmax.f32 %v773_v35, 0.0  ;;  %v1267_v46 = vpack.c.bf16 %v823_v38, %v822_v37  ;;  %v821_v47 = vmax.f32 %v789_v39, 0.0 }
  0xdf   : > { %v555_v48 = vpop.f32.mrf.mxu0  ;;  %v778_v50 = vadd.f32 %v1342_v40, %v1529_v20  ;;  %v619_v51 = vpop.f32.mrf.mxu1  ;;  %v794_v53 = vadd.f32 %v1358_v44, %v1529_v20 }
  0xe0   : > { %1299 = vst [vmem:[%s1543_s29 + $0x8] sm:$0xff] %v1227_v42   ;;  %v1222_v49 = vpack.c.bf16 %v805_v43, %v804_v41  ;;  %1307 = vst [vmem:[%s1543_s29 + $0x48] sm:$0xff] %v1267_v46   ;;  %v1262_v52 = vpack.c.bf16 %v821_v47, %v820_v45  ;;  %v776_v55 = vadd.f32 %v1529_v20, %v555_v48 }
  0xe1   : > { %v1343_v54 = vpop.f32.mrf.mxu0  ;;  %v1359_v57 = vpop.f32.mrf.mxu1  ;;  %v792_v58 = vadd.f32 %v1529_v20, %v619_v51  ;;  %v810_v61 = vmax.f32 %v778_v50, 0.0  ;;  %v826_v1 = vmax.f32 %v794_v53, 0.0 }
  0xe2   : > { %1223 = vst [vmem:[%s1543_s29] sm:$0xff] %v1222_v49   ;;  %v779_v56 = vadd.f32 %v1343_v54, %v1529_v20  ;;  %1306 = vst [vmem:[%s1543_s29 + $0x40] sm:$0xff] %v1262_v52   ;;  %v795_v59 = vadd.f32 %v1359_v57, %v1529_v20  ;;  %v808_v5 = vmax.f32 %v776_v55, 0.0 }
  0xe3   : > { %v558_v60 = vpop.f32.mrf.mxu0  ;;  %v622_v0 = vpop.f32.mrf.mxu1  ;;  %v824_v9 = vmax.f32 %v792_v58, 0.0 }
  0xe4   : > { %v811_v62 = vmax.f32 %v779_v56, 0.0  ;;  %v777_v63 = vadd.f32 %v1529_v20, %v558_v60  ;;  %v827_v2 = vmax.f32 %v795_v59, 0.0  ;;  %v793_v3 = vadd.f32 %v1529_v20, %v622_v0 }
  0xe5   : > { %v1346_v4 = vpop.f32.mrf.mxu0  ;;  %v1362_v8 = vpop.f32.mrf.mxu1 }
  0xe6   : > { %v1237_v6 = vpack.c.bf16 %v811_v62, %v810_v61  ;;  %v809_v7 = vmax.f32 %v777_v63, 0.0  ;;  %v1277_v10 = vpack.c.bf16 %v827_v2, %v826_v1  ;;  %v825_v11 = vmax.f32 %v793_v3, 0.0 }
  0xe7   : > { %v571_v12 = vpop.f32.mrf.mxu0  ;;  %v782_v14 = vadd.f32 %v1346_v4, %v1529_v20  ;;  %v635_v15 = vpop.f32.mrf.mxu1  ;;  %v798_v17 = vadd.f32 %v1362_v8, %v1529_v20 }
  0xe8   : > { %1301 = vst [vmem:[%s1543_s29 + $0x18] sm:$0xff] %v1237_v6   ;;  %v1232_v13 = vpack.c.bf16 %v809_v7, %v808_v5  ;;  %1309 = vst [vmem:[%s1543_s29 + $0x58] sm:$0xff] %v1277_v10   ;;  %v1272_v16 = vpack.c.bf16 %v825_v11, %v824_v9  ;;  %v780_v19 = vadd.f32 %v1529_v20, %v571_v12 }
  0xe9   : > { %v1347_v18 = vpop.f32.mrf.mxu0  ;;  %v1363_v22 = vpop.f32.mrf.mxu1  ;;  %v796_v23 = vadd.f32 %v1529_v20, %v635_v15  ;;  %v814_v26 = vmax.f32 %v782_v14, 0.0  ;;  %v830_v30 = vmax.f32 %v798_v17, 0.0 }
  0xea   : > { %1300 = vst [vmem:[%s1543_s29 + $0x10] sm:$0xff] %v1232_v13   ;;  %v783_v21 = vadd.f32 %v1347_v18, %v1529_v20  ;;  %1308 = vst [vmem:[%s1543_s29 + $0x50] sm:$0xff] %v1272_v16   ;;  %v799_v24 = vadd.f32 %v1363_v22, %v1529_v20  ;;  %v812_v34 = vmax.f32 %v780_v19, 0.0 }
  0xeb   : > { %v574_v25 = vpop.f32.mrf.mxu0  ;;  %v638_v29 = vpop.f32.mrf.mxu1  ;;  %v828_v38 = vmax.f32 %v796_v23, 0.0 }
  0xec   : > { %v815_v27 = vmax.f32 %v783_v21, 0.0  ;;  %v781_v28 = vadd.f32 %v1529_v20, %v574_v25  ;;  %v831_v31 = vmax.f32 %v799_v24, 0.0  ;;  %v797_v32 = vadd.f32 %v1529_v20, %v638_v29 }
  0xed   : > { %v1350_v33 = vpop.f32.mrf.mxu0  ;;  %v1366_v37 = vpop.f32.mrf.mxu1 }
  0xee   : > { %v1247_v35 = vpack.c.bf16 %v815_v27, %v814_v26  ;;  %v813_v36 = vmax.f32 %v781_v28, 0.0  ;;  %v1287_v39 = vpack.c.bf16 %v831_v31, %v830_v30  ;;  %v829_v40 = vmax.f32 %v797_v32, 0.0 }
  0xef   : > { %v587_v41 = vpop.f32.mrf.mxu0  ;;  %v786_v43 = vadd.f32 %v1350_v33, %v1529_v20  ;;  %v651_v44 = vpop.f32.mrf.mxu1  ;;  %v802_v46 = vadd.f32 %v1366_v37, %v1529_v20 }
  0xf0   : > { %1303 = vst [vmem:[%s1543_s29 + $0x28] sm:$0xff] %v1247_v35   ;;  %v1242_v42 = vpack.c.bf16 %v813_v36, %v812_v34  ;;  %1311 = vst [vmem:[%s1543_s29 + $0x68] sm:$0xff] %v1287_v39   ;;  %v1282_v45 = vpack.c.bf16 %v829_v40, %v828_v38  ;;  %v784_v48 = vadd.f32 %v1529_v20, %v587_v41 }
  0xf1   : > { %v1351_v47 = vpop.f32.mrf.mxu0  ;;  %v1367_v50 = vpop.f32.mrf.mxu1  ;;  %v800_v51 = vadd.f32 %v1529_v20, %v651_v44  ;;  %v818_v54 = vmax.f32 %v786_v43, 0.0  ;;  %v834_v58 = vmax.f32 %v802_v46, 0.0 }
  0xf2   : > { %1302 = vst [vmem:[%s1543_s29 + $0x20] sm:$0xff] %v1242_v42   ;;  %v787_v49 = vadd.f32 %v1351_v47, %v1529_v20  ;;  %1310 = vst [vmem:[%s1543_s29 + $0x60] sm:$0xff] %v1282_v45   ;;  %v803_v52 = vadd.f32 %v1367_v50, %v1529_v20  ;;  %v816_v61 = vmax.f32 %v784_v48, 0.0 }
  0xf3   : > { %v590_v53 = vpop.f32.mrf.mxu0  ;;  %v654_v57 = vpop.f32.mrf.mxu1  ;;  %v832_v0 = vmax.f32 %v800_v51, 0.0 }
  0xf4   : > { %v819_v55 = vmax.f32 %v787_v49, 0.0  ;;  %v785_v56 = vadd.f32 %v1529_v20, %v590_v53  ;;  %v835_v59 = vmax.f32 %v803_v52, 0.0  ;;  %v801_v60 = vadd.f32 %v1529_v20, %v654_v57 }
  0xf6   : > { %v1257_v62 = vpack.c.bf16 %v819_v55, %v818_v54  ;;  %v817_v63 = vmax.f32 %v785_v56, 0.0  ;;  %v1297_v1 = vpack.c.bf16 %v835_v59, %v834_v58  ;;  %v833_v2 = vmax.f32 %v801_v60, 0.0 }
  0xf8   : > { %1305 = vst [vmem:[%s1543_s29 + $0x38] sm:$0xff] %v1257_v62   ;;  %v1252_v3 = vpack.c.bf16 %v817_v63, %v816_v61  ;;  %1313 = vst [vmem:[%s1543_s29 + $0x78] sm:$0xff] %v1297_v1   ;;  %v1292_v4 = vpack.c.bf16 %v833_v2, %v832_v0 }
  0xfa   : > { %1304 = vst [vmem:[%s1543_s29 + $0x30] sm:$0xff] %v1252_v3   ;;  %1312 = vst [vmem:[%s1543_s29 + $0x70] sm:$0xff] %v1292_v4  }
  0xfb PF: > { %s13_s14 = sadd.s32 1, %s1438_s14   ;;  %s1599_s12 = smov %s1434_s13 }
  0xfc   : > { %p10_p5 = scmp.ge.s32.totalorder %s13_s14, 4   ;;  %s1600_s13 = smov %s1602_s15 }
  0xfe   :  { %12 = sbr.rel (!%p10_p5) target bundleno = 2 (0x2), region = 76 }

// kernel: res_block_forward.7
= control target key start
LH: loop header
LB: loop body
LE: loop exit
PB: predicated region body
PF: predicated region fallthrough
CT: control target
= control target key end

     0   :  { %vm81_vm0 = vcmask 1043456   ;;  %vm68_vm1 = vcmask 64512   ;;  %s385_s0 = inlined_call_operand.vmem [shape: bf16[64,8], index: 0, kind: input, shape index: {}]   ;;  %s386_s1 = inlined_call_operand.vmem [shape: bf16[8,128], index: 1, kind: input, shape index: {}]   ;;  %s387_s2 = inlined_call_operand.vmem [shape: f32[1,128], index: 2, kind: input, shape index: {}]   ;;  %s388_s3 = inlined_call_operand.vmem [shape: bf16[64,128], index: 3, kind: input, shape index: {}]   ;;  %s389_s4 = inlined_call_operand.hbm [shape: f32[64,128], index: 4, kind: output, shape index: {}]  }
   0x1   :  { %v47_v0 = vld [vmem:[%s386_s1] sm:$0xf]  ;;  %v299_v3 = vld [vmem:[%s385_s0 + $0x10] sm:$0xff]   ;;  %v300_v4 = vld [vmem:[%s385_s0 + $0x8] sm:$0xff]  }
   0x2   :  { %v298_v1 = vld [vmem:[%s385_s0] sm:$0xff]   ;;  %293 = vmatprep.subr.msk.bf16.mxu0 %vm81_vm0, %v47_v0  ;;  %294 = vmatprep.subr.msk.bf16.mxu1 %vm81_vm0, %v47_v0  ;;  %v83_v2 = vsel %vm81_vm0, %v47_v0, 0  ;;  %v301_v5 = vld [vmem:[%s385_s0 + $0x18] sm:$0xff]  }
   0x3   :  { %282 = vmatpush3.bf16.msra.mxu0 %v83_v2  ;;  %292 = vmatpush3.bf16.msra.mxu1 %v83_v2 }
   0x4   :  { %283 = vmatprep.mubr.msk.bf16.mxu0 %vm68_vm1, %v298_v1  ;;  %287 = vmatprep.mubr.msk.bf16.mxu1 %vm68_vm1, %v299_v3 }
   0x5   :  { %9 = vsyncpa [#allocation4], 0  ;;  %v273_v6 = vld [vmem:[%s388_s3 + $0x8] sm:$0xff]   ;;  %v275_v7 = vld [vmem:[%s388_s3 + $0x18] sm:$0xff]  }
   0x6   :  { %284 = vmatmul.mubr.msk.bf16.vlgmr.msra.gmra.mxu0 %vm68_vm1, %v300_v4  ;;  %288 = vmatmul.mubr.msk.bf16.vlgmr.msra.gmra.mxu1 %vm68_vm1, %v301_v5  ;;  %v256_v8 = vld [vmem:[%s387_s2] ss:$0 sm:$0xff]  ;;  %v263_v10 = vunpack.c.l.bf16 %v273_v6  ;;  %v274_v11 = vld [vmem:[%s388_s3 + $0x10] sm:$0xff]   ;;  %v271_v13 = vunpack.c.l.bf16 %v275_v7  ;;  %v264_v23 = vunpack.c.h.bf16 %v273_v6  ;;  %v272_v27 = vunpack.c.h.bf16 %v275_v7  ;;  %s324_s2 = smov [#allocation3]  }
   0x7   :  { %v258_v9 = vld [vmem:[%s388_s3] sm:$0xff]   ;;  %v267_v19 = vunpack.c.l.bf16 %v274_v11  ;;  %v268_v37 = vunpack.c.h.bf16 %v274_v11  ;;  %s237_s3 = sshll.u32 %s324_s2, 4  ;;  %s238_s3 = int_to_ptr.vmem [resolvable:$true] %s237_s3 }
   0x8   :  { %v259_v16 = vunpack.c.l.bf16 %v258_v9  ;;  %v260_v32 = vunpack.c.h.bf16 %v258_v9  ;;  %s302_s7 = scalar_lea.vmem %s238_s3, 1024  ;;  %p307_p1 = scmp.lt.s32.totalorder %s238_s3, %s238_s3 }
   0x9   :  { %p303_p0 = scmp.ne.s32.totalorder %s238_s3, %s302_s7  ;;  %p308_p2 = scmp.lt.s32.totalorder %s302_s7, %s302_s7 }
   0xb   :  { %p309_p3 = por %p308_p2, %p307_p1 }
   0xd   :  { %p310_p4 = pnand %p309_p3, %p303_p0 }
  0xc6   :  { %v285_v12 = vpop.f32.mrf.mxu0  ;;  %v289_v15 = vpop.f32.mrf.mxu1 }
  0xc7   :  { %v186_v14 = vadd.f32 %v285_v12, %v256_v8  ;;  %v190_v17 = vadd.f32 %v289_v15, %v256_v8 }
  0xc8   :  { %v119_v18 = vpop.f32.mrf.mxu0  ;;  %v135_v22 = vpop.f32.mrf.mxu1 }
  0xc9   :  { %v210_v20 = vadd.f32 %v263_v10, %v186_v14  ;;  %v184_v21 = vadd.f32 %v256_v8, %v119_v18  ;;  %v214_v24 = vadd.f32 %v271_v13, %v190_v17  ;;  %v188_v25 = vadd.f32 %v256_v8, %v135_v22 }
  0xca   :  { %v286_v26 = vpop.f32.mrf.mxu0  ;;  %v290_v31 = vpop.f32.mrf.mxu1 }
  0xcb   :  { %v218_v28 = vmax.f32 %v210_v20, 0.0  ;;  %v208_v29 = vadd.f32 %v259_v16, %v184_v21  ;;  %v187_v30 = vadd.f32 %v286_v26, %v256_v8  ;;  %v222_v33 = vmax.f32 %v214_v24, 0.0 }
  0xcc   :  { %v212_v34 = vadd.f32 %v267_v19, %v188_v25  ;;  %v191_v35 = vadd.f32 %v290_v31, %v256_v8  ;;  %v122_v36 = vpop.f32.mrf.mxu0  ;;  %v138_v41 = vpop.f32.mrf.mxu1 }
  0xcd   :  { %226 = vst [vmem:[#allocation3 + $0x10] sm:$0xff] %v218_v28  ;;  %v216_v38 = vmax.f32 %v208_v29, 0.0  ;;  %v211_v39 = vadd.f32 %v264_v23, %v187_v30  ;;  %v185_v40 = vadd.f32 %v256_v8, %v122_v36  ;;  %230 = vst [vmem:[#allocation3 + $0x30] sm:$0xff] %v222_v33  ;;  %v189_v44 = vadd.f32 %v256_v8, %v138_v41 }
  0xce   :  { %v220_v42 = vmax.f32 %v212_v34, 0.0  ;;  %v215_v43 = vadd.f32 %v272_v27, %v191_v35 }
  0xcf   :  { %224 = vst [vmem:[#allocation3] sm:$0xff] %v216_v38  ;;  %v219_v45 = vmax.f32 %v211_v39, 0.0  ;;  %v209_v46 = vadd.f32 %v260_v32, %v185_v40  ;;  %v213_v48 = vadd.f32 %v268_v37, %v189_v44 }
  0xd0   :  { %228 = vst [vmem:[#allocation3 + $0x20] sm:$0xff] %v220_v42  ;;  %v223_v47 = vmax.f32 %v215_v43, 0.0 }
  0xd1   :  { %227 = vst [vmem:[#allocation3 + $0x18] sm:$0xff] %v219_v45  ;;  %v217_v49 = vmax.f32 %v209_v46, 0.0  ;;  %v221_v50 = vmax.f32 %v213_v48, 0.0 }
  0xd2   :  { %231 = vst [vmem:[#allocation3 + $0x38] sm:$0xff] %v223_v47 }
  0xd3   :  { %225 = vst [vmem:[#allocation3 + $0x8] sm:$0xff] %v217_v49  ;;  %229 = vst [vmem:[#allocation3 + $0x28] sm:$0xff] %v221_v50 }
  0xd4   :  { %313 = shalt.err (!%p310_p4)
}
  0xd5   :  { %s325_s8 = smov 128   ;;  %s326_s9 = smov 8  }
  0xd6   :  { %243 = dma.vmem_to_hbm [thread:$0]  %s238_s3, 1024, %s389_s4, [#allocation4], %s325_s8, %s325_s8, %s326_s9  }
  0xd7   :  { %322 = dma.done.wait [#allocation4], 1024  }
  0xd8   :  { %323 = vsyncadd [#allocation4], 4294966272 }
  0xd9   :  { %247 = vsyncpa [#allocation4], 1 }

// kernel: res_block_forward.5
= control target key start
LH: loop header
LB: loop body
LE: loop exit
PB: predicated region body
PF: predicated region fallthrough
CT: control target
= control target key end

     0   :  { %s1999_s21 = smov 0   ;;  %s2353_s0 = inlined_call_operand.vmem [shape: bf16[4,1,5,5,8], index: 0, kind: input, shape index: {}]   ;;  %s2354_s1 = inlined_call_operand.vmem [shape: bf16[4,1,5,5,8], index: 1, kind: input, shape index: {}]   ;;  %s2355_s2 = inlined_call_operand.vmem [shape: bf16[4,1,5,5,8], index: 2, kind: input, shape index: {}]   ;;  %s2356_s3 = inlined_call_operand.vmem [shape: bf16[4,1,5,5,8], index: 3, kind: input, shape index: {}]   ;;  %s2357_s4 = inlined_call_operand.vmem [shape: bf16[9,2,4,4], index: 4, kind: input, shape index: {}]   ;;  %s2358_s5 = inlined_call_operand.vmem [shape: f32[1,8], index: 5, kind: input, shape index: {}]   ;;  %s2359_s6 = inlined_call_operand.vmem [shape: bf16[4,16,8], index: 6, kind: output, shape index: {}]  }
   0x1 LB: > { %s1742_s22 = sadd.s32 4294967295, %s1957_s21   ;;  %p1746_p0 = scmp.ge.s32.totalorder %s1957_s21, 1  ;;  %s1957_s21 = sphi %s1999_s21, %s16_s21  }
   0x2   : > { %p242_p1 = scmp.lt.s32.totalorder %s1957_s21, 5 }
   0x4   : > { %p243_p2 = pnand %p1746_p0, %p242_p1 }
   0x5   : > { %p287_p3 = scmp.lt.s32.totalorder (!%p243_p2), %s1742_s22, 3  ;;  %s1962_s15 = smov (!%p243_p2), 124  }
   0x6   : > { %246 = sbr.rel (%p243_p2) target bundleno = 524 (0x20c), region = 44  ;;  %s1963_s29 = smov (!%p243_p2), 4  }
   0xb   : > { %v358_v0 = vlaneseq  ;;  %v1959_v1 = vmov 1983009808   ;;  %s2363_s22 = smov (!%p287_p3, %s1742_s22), 3  ;;  %v331_v4 = vld [vmem:[%s2357_s4] sm:$0x3]  ;;  %vm374_vm0 = vcmask 1041408  }
   0xc   : > { %v356_v2 = vunpack.c.l.s4 %v1959_v1  ;;  %v1960_v6 = vmov 0.0   ;;  %v444_v7 = vsel %vm374_vm0, %v331_v4, 0  ;;  %v333_v8 = vld [vmem:[%s2357_s4 + $0x4] sm:$0x3]  ;;  %s2019_s27 = smul.u32 20, %s2363_s22  ;;  %vm1961_vm1 = vmmov 0  }
   0xd   : > { %v359_v3 = vshrl.u32 %v358_v0, 7  ;;  %1821 = vmatprep.subr.bf16.mxu1 %v1960_v6  ;;  %1815 = vmatprep.subr.bf16.mxu0 %v1960_v6  ;;  %v376_v9 = vsel %vm374_vm0, %v333_v8, 0  ;;  %v332_v10 = vld [vmem:[%s2357_s4 + $0x2] sm:$0x3]  ;;  %vm617_vm2 = vsmask.f32 1280 }
   0xe   : > { %v357_v5 = vunpack.c.0.s8 %v356_v2  ;;  %1822 = vmatpush3.bf16.msra.mxu1 %v444_v7  ;;  %1823 = vmatprep.mubr.msk.bf16.mxu1 %vm1961_vm1, %v1960_v6  ;;  %vm618_vm3 = vsmask.f32 3336  ;;  %s2035_s8 = scalar_lea.vmem %s2353_s0, %s2019_s27  ;;  %vm620_vm4 = vsmask.f32 5392  ;;  %vm622_vm5 = vsmask.f32 7448  ;;  %s2041_s11 = scalar_lea.vmem %s2355_s2, %s2019_s27 }
   0xf   : > { %1816 = vmatpush3.bf16.msra.mxu0 %v376_v9  ;;  %1817 = vmatprep.mubr.msk.bf16.mxu0 %vm1961_vm1, %v1960_v6  ;;  %vm370_vm6 = vcmask 31744   ;;  %v542_v12 = vsel %vm374_vm0, %v332_v10, 0  ;;  %v313_v13 = vld [vmem:[%s2035_s8] sm:$0x7]  ;;  %v2048_v14 = vld [vmem:[%s2035_s8 + $0x4] sm:$0x7]  ;;  %vm619_vm7 = vmor %vm617_vm2, %vm618_vm3  ;;  %s2088_s14 = scalar_lea.vmem %s2356_s3, %s2019_s27  ;;  %s2138_s18 = scalar_lea.vmem %s2354_s1, %s2019_s27 }
  0x10   : > { %v2027_v11 = vsub.s32 %v357_v5, %v359_v3  ;;  %1833 = vmatprep.subr.bf16.mxu1 %v1960_v6  ;;  %1827 = vmatprep.subr.bf16.mxu0 %v1960_v6  ;;  %v2051_v15 = vld [vmem:[%s2035_s8 + $0x8] sm:$0x7]  ;;  %v2054_v16 = vld [vmem:[%s2035_s8 + $0xc] sm:$0x7]  ;;  %v423_v17 = vcombine.low %v313_v13, %v2048_v14  ;;  %v2063_v21 = vld [vmem:[%s2041_s11] sm:$0x7] }
  0x11   : > { %v2066_v22 = vld [vmem:[%s2041_s11 + $0x4] sm:$0x7]  ;;  %v424_v23 = vcombine.low %v2051_v15, %v2054_v16  ;;  %vm621_vm8 = vmor %vm619_vm7, %vm620_vm4  ;;  %v2098_v56 = vld [vmem:[%s2041_s11 + $0x8] sm:$0x7]  ;;  %vm1648_vm10 = vcmask 60416  }
  0x12   : > { %v591_v18 = vrot.slane %v313_v13, %v2027_v11  ;;  %v599_v19 = vrot.slane %v2048_v14, %v2027_v11  ;;  %v607_v20 = vrot.slane %v2051_v15, %v2027_v11  ;;  %v615_v24 = vrot.slane %v2054_v16, %v2027_v11  ;;  %vm2093_vm9 = vmor %vm621_vm8, %vm622_vm5  ;;  %v2102_v61 = vld [vmem:[%s2041_s11 + $0xc] sm:$0x7]  ;;  %v336_v53 = vld [vmem:[%s2357_s4 + $0xa] sm:$0x3] }
  0x13   : > { %v2074_v25 = vrot.slane %v2063_v21, %v2027_v11  ;;  %v2078_v26 = vrot.slane %v2066_v22, %v2027_v11  ;;  %v431_v27 = vrot.slane %v423_v17, %v2027_v11  ;;  %v438_v31 = vrot.slane %v424_v23, %v2027_v11 }
  0x14   : > { %v592_v28 = vcombine.high %v591_v18, %v591_v18  ;;  %v625_v29 = vshrl.u32 %v591_v18, 16  ;;  %v628_v30 = vshll.u32 %v591_v18, 16  ;;  %v639_v32 = vshrl.u32 %v599_v19, 16 }
  0x15   : > { %v642_v33 = vshll.u32 %v599_v19, 16  ;;  %v653_v34 = vshrl.u32 %v607_v20, 16  ;;  %v656_v38 = vshll.u32 %v607_v20, 16  ;;  %v439_v39 = vcombine.low %v431_v27, %v438_v31 }
  0x16   : > { %v627_v35 = vrot.slane %v625_v29, 6  ;;  %v630_v36 = vrot.slane %v628_v30, 7  ;;  %v634_v37 = vshll.u32 %v592_v28, 16  ;;  %v641_v40 = vrot.slane %v639_v32, 6 }
  0x17   : > { %v644_v41 = vrot.slane %v642_v33, 7  ;;  %v655_v42 = vrot.slane %v653_v34, 6  ;;  %v658_v44 = vrot.slane %v656_v38, 7  ;;  %v667_v45 = vshrl.u32 %v615_v24, 16  ;;  %536 = vrot.lane.b32.xlu0 %v439_v39, %s1962_s15  ;;  %1824 = vmatmul.mubr.msk.bf16.vlgmr.msra.gmra.mxu1 %vm370_vm6, %v439_v39 }
  0x18   : > { %v636_v43 = vrot.slane %v634_v37, 7  ;;  %v670_v46 = vshll.u32 %v615_v24, 16  ;;  %v600_v47 = vcombine.high %v599_v19, %v599_v19  ;;  %v608_v48 = vcombine.high %v607_v20, %v607_v20  ;;  %1834 = vmatpush3.bf16.msra.mxu1 %v542_v12  ;;  %1835 = vmatprep.mubr.msk.bf16.mxu1 %vm1961_vm1, %v1960_v6 }
  0x19   : > { %v616_v49 = vcombine.high %v615_v24, %v615_v24  ;;  %v631_v50 = vor.u32 %v630_v36, %v627_v35  ;;  %v669_v51 = vrot.slane %v667_v45, 6  ;;  %v645_v54 = vor.u32 %v644_v41, %v641_v40  ;;  %1845 = vmatprep.subr.bf16.mxu1 %v1960_v6 }
  0x1a   : > { %v672_v52 = vrot.slane %v670_v46, 7  ;;  %v659_v55 = vor.u32 %v658_v44, %v655_v42  ;;  %v648_v58 = vshll.u32 %v600_v47, 16  ;;  %v662_v59 = vshll.u32 %v608_v48, 16  ;;  %v318_v42 = vld [vmem:[%s2138_s18] sm:$0x7] }
  0x1b   : > { %v632_v57 = vrot.slane %v631_v50, 2  ;;  %v676_v60 = vshll.u32 %v616_v49, 16  ;;  %v646_v62 = vrot.slane %v645_v54, 2  ;;  %v1046_v1 = vcombine.high %v2074_v25, %v2074_v25 }
  0x1c   : > { %v660_v63 = vrot.slane %v659_v55, 2  ;;  %v673_v0 = vor.u32 %v672_v52, %v669_v51  ;;  %v650_v3 = vrot.slane %v648_v58, 7  ;;  %v664_v4 = vrot.slane %v662_v59, 7  ;;  %v320_v51 = vld [vmem:[%s2138_s18 + $0x8] sm:$0x7] }
  0x1d   : > { %v637_v2 = vsel %vm2093_vm9, %v632_v57, %v636_v43  ;;  %v678_v5 = vrot.slane %v676_v60, 7  ;;  %v1054_v8 = vcombine.high %v2078_v26, %v2078_v26  ;;  %v1061_v9 = vrot.slane %v2098_v56, %v2027_v11  ;;  %v321_v58 = vld [vmem:[%s2138_s18 + $0xc] sm:$0x7] }
  0x1e   : > { %v674_v7 = vrot.slane %v673_v0, 2  ;;  %v1069_v10 = vrot.slane %v2102_v61, %v2027_v11  ;;  %v2119_v12 = vsel %vm2093_vm9, %v646_v62, %v650_v3  ;;  %v2123_v13 = vsel %vm2093_vm9, %v660_v63, %v664_v4  ;;  %v1949_v59 = vld.sshfl [vmem:[%s2088_s14] sm:$0x5f pattern:$0x76325410] }
  0x1f   : > { %v1072_v17 = vshrl.u32 %v2074_v25, 16  ;;  %v1075_v18 = vshll.u32 %v2074_v25, 16  ;;  %v680_v20 = vcombine.low %v637_v2, %v2119_v12  ;;  %v1062_v23 = vcombine.high %v1061_v9, %v1061_v9 }
  0x20   : > { %v2129_v19 = vsel %vm2093_vm9, %v674_v7, %v678_v5  ;;  %v1070_v24 = vcombine.high %v1069_v10, %v1069_v10  ;;  %v1081_v30 = vshll.u32 %v1046_v1, 16  ;;  %v1086_v31 = vshrl.u32 %v2078_v26, 16  ;;  %v1950_v1 = vld.sshfl [vmem:[%s2088_s14 + $0x8] sm:$0x5f pattern:$0x76325410] }
  0x21   : > { %v681_v27 = vcombine.low %v2123_v13, %v2129_v19  ;;  %v1074_v28 = vrot.slane %v1072_v17, 6  ;;  %v1077_v29 = vrot.slane %v1075_v18, 7  ;;  %v688_v25 = vrot.slane %v680_v20, %v2027_v11 }
  0x22   : > { %v1089_v32 = vshll.u32 %v2078_v26, 16  ;;  %v1095_v33 = vshll.u32 %v1054_v8, 16  ;;  %v1083_v36 = vrot.slane %v1081_v30, 7  ;;  %v1100_v37 = vshrl.u32 %v1061_v9, 16  ;;  %v319_v26 = vld [vmem:[%s2138_s18 + $0x4] sm:$0x7] }
  0x23   : > { %v695_v34 = vrot.slane %v681_v27, %v2027_v11  ;;  %v1078_v35 = vor.u32 %v1077_v29, %v1074_v28  ;;  %v1088_v38 = vrot.slane %v1086_v31, 6  ;;  %v1103_v41 = vshll.u32 %v1061_v9, 16  ;;  %v317_v9 = vld [vmem:[%s2035_s8 + $0x10] sm:$0x7]  ;;  %s1776_s8 = sshll.u32 %s2363_s22, 3 }
  0x24   : > { %v1091_v39 = vrot.slane %v1089_v32, 7  ;;  %v1097_v40 = vrot.slane %v1095_v33, 7  ;;  %v1102_v45 = vrot.slane %v1100_v37, 6  ;;  %v1109_v46 = vshll.u32 %v1062_v23, 16  ;;  %v322_v29 = vld [vmem:[%s2138_s18 + $0x10] sm:$0x7]  ;;  %s311_s11 = scalar_lea.vmem %s2359_s6, %s1776_s8 }
  0x25   : > { %v2145_v43 = vcombine.low %v688_v25, %v695_v34  ;;  %v1079_v44 = vrot.slane %v1078_v35, 2  ;;  %v1105_v48 = vrot.slane %v1103_v41, 7  ;;  %v1114_v49 = vshrl.u32 %v1069_v10, 16 }
  0x26   : > { %v1092_v47 = vor.u32 %v1091_v39, %v1088_v38  ;;  %v1117_v50 = vshll.u32 %v1069_v10, 16  ;;  %v1111_v54 = vrot.slane %v1109_v46, 7  ;;  %v1123_v55 = vshll.u32 %v1070_v24, 16  ;;  %v334_v38 = vld [vmem:[%s2357_s4 + $0x6] sm:$0x3] }
  0x27   : > { %746 = vrot.lane.b32.xlu0 %v2145_v43, %s1962_s15  ;;  %v1084_v52 = vsel %vm2093_vm9, %v1079_v44, %v1083_v36  ;;  %v801_v57 = vcombine.low %v2063_v21, %v2066_v22  ;;  %v1106_v62 = vor.u32 %v1105_v48, %v1102_v45  ;;  %v1116_v63 = vrot.slane %v1114_v49, 6 }
  0x28   : > { %v1093_v60 = vrot.slane %v1092_v47, 2  ;;  %v1119_v0 = vrot.slane %v1117_v50, 7  ;;  %v1125_v2 = vrot.slane %v1123_v55, 7  ;;  %v802_v3 = vcombine.low %v2098_v56, %v2102_v61 }
  0x29   : > { %v809_v4 = vrot.slane %v801_v57, %v2027_v11  ;;  %v353_v5 = vcombine.low %v318_v42, %v319_v26  ;;  %v1107_v21 = vrot.slane %v1106_v62, 2  ;;  %v354_v8 = vcombine.low %v320_v51, %v321_v58  ;;  %v340_v62 = vld [vmem:[%s2357_s4 + $0x12] sm:$0x3] }
  0x2a   : > { %v1098_v7 = vsel %vm2093_vm9, %v1093_v60, %v1097_v40  ;;  %v1120_v22 = vor.u32 %v1119_v0, %v1116_v63  ;;  %v816_v17 = vrot.slane %v802_v3, %v2027_v11  ;;  %v1245_v27 = vcombine.low %v2048_v14, %v2051_v15  ;;  %v335_v3 = vld [vmem:[%s2357_s4 + $0x8] sm:$0x3] }
  0x2b   : > { %v1127_v10 = vcombine.low %v1084_v52, %v1098_v7  ;;  %v361_v18 = vrot.slane %v353_v5, %v2027_v11  ;;  %v1112_v20 = vsel %vm2093_vm9, %v1107_v21, %v1111_v54  ;;  %v368_v61 = vrot.slane %v354_v8, %v2027_v11  ;;  %v337_v8 = vld [vmem:[%s2357_s4 + $0xc] sm:$0x3] }
  0x2c   : > { %v1121_v56 = vrot.slane %v1120_v22, 2  ;;  %v2170_v24 = vcombine.low %v809_v4, %v816_v17  ;;  %v1246_v28 = vcombine.low %v2054_v16, %v317_v9  ;;  %v2178_v31 = vcombine.low %v1949_v59, %v1950_v1  ;;  %v342_v1 = vld [vmem:[%s2357_s4 + $0x16] sm:$0x3]  ;;  %v344_v22 = vld [vmem:[%s2357_s4 + $0x1a] sm:$0x3] }
  0x2d   : > { %v1135_v23 = vrot.slane %v1127_v10, %v2027_v11  ;;  %v369_v25 = vcombine.low %v361_v18, %v368_v61  ;;  %v1486_v32 = vrot.slane %v317_v9, %v2027_v11  ;;  %v1253_v34 = vrot.slane %v1245_v27, %v2027_v11  ;;  %v346_v17 = vld [vmem:[%s2357_s4 + $0x1e] sm:$0x3]  ;;  %v339_v18 = vld [vmem:[%s2357_s4 + $0x10] sm:$0x3]  ;;  %v348_v61 = vld [vmem:[%s2357_s4 + $0x22] sm:$0x3] }
  0x2e   : > { %v1126_v30 = vsel %vm2093_vm9, %v1121_v56, %v1125_v2  ;;  %867 = vrot.lane.b32.xlu1 %v2170_v24, %s1962_s15  ;;  %v1260_v35 = vrot.slane %v1246_v28, %v2027_v11  ;;  %v1363_v14 = vcombine.low %v319_v26, %v320_v51  ;;  %v1364_v36 = vcombine.low %v321_v58, %v322_v29  ;;  %v343_v29 = vld [vmem:[%s2357_s4 + $0x18] sm:$0x3] }
  0x2f   : > { %v1128_v33 = vcombine.low %v1112_v20, %v1126_v30  ;;  %v1489_v15 = vshrl.u32 %v1486_v32, 16  ;;  %v1492_v16 = vshll.u32 %v1486_v32, 16  ;;  %v1487_v37 = vcombine.high %v1486_v32, %v1486_v32  ;;  %1818 = vmatmul.mubr.msk.bf16.vlgmr.msra.gmra.mxu0 %vm370_vm6, %v369_v25 }
  0x30   : > { %1829 = vmatprep.mubr.msk.bf16.mxu0 %vm1961_vm1, %v1960_v6  ;;  %v2192_v40 = vcombine.low %v1253_v34, %v1260_v35  ;;  %v1371_v46 = vrot.slane %v1363_v14, %v2027_v11  ;;  %v1378_v26 = vrot.slane %v1364_v36, %v2027_v11  ;;  %v493_v47 = vsel %vm374_vm0, %v334_v38, 0 }
  0x31   : > { %v1142_v39 = vrot.slane %v1128_v33, %v2027_v11  ;;  %v1491_v41 = vrot.slane %v1489_v15, 6  ;;  %v1494_v42 = vrot.slane %v1492_v16, 7  ;;  %v1498_v44 = vshll.u32 %v1487_v37, 16  ;;  %1828 = vmatpush3.bf16.msra.mxu0 %v493_v47  ;;  %v347_v33 = vld [vmem:[%s2357_s4 + $0x20] sm:$0x3] }
  0x32   : > { %988 = vrot.lane.b32.xlu1 %v2178_v31, %s1962_s15  ;;  %v1502_v50 = vcombine.low %v2119_v12, %v2123_v13  ;;  %1839 = vmatprep.subr.bf16.mxu0 %v1960_v6  ;;  %v2208_v52 = vcombine.low %v1371_v46, %v1378_v26  ;;  %v752_v58 = vsel %vm374_vm0, %v336_v53, 0  ;;  %v994_v63 = vsel %vm374_vm0, %v340_v62, 0 }
  0x33   : > { %v2194_v45 = vcombine.low %v1135_v23, %v1142_v39  ;;  %v1495_v48 = vor.u32 %v1494_v42, %v1491_v41  ;;  %v1500_v49 = vrot.slane %v1498_v44, 7  ;;  %v1199_v5 = vsel %vm374_vm0, %v342_v1, 0  ;;  %v341_v23 = vld [vmem:[%s2357_s4 + $0x14] sm:$0x3] }
  0x34   : > { %v1510_v57 = vrot.slane %v1502_v50, %v2027_v11  ;;  %v701_v7 = vsel %vm374_vm0, %v335_v3, 0  ;;  %v1317_v9 = vsel %vm374_vm0, %v344_v22, 0  ;;  %v822_v10 = vsel %vm374_vm0, %v337_v8, 0 }
  0x35   : > { %1193 = vrot.lane.b32.xlu0 %v2194_v45, %s1962_s15  ;;  %v1496_v51 = vrot.slane %v1495_v48, 2  ;;  %v1435_v56 = vsel %vm374_vm0, %v346_v17, 0  ;;  %v1574_v28 = vsel %vm374_vm0, %v348_v61, 0  ;;  %v1523_v34 = vsel %vm374_vm0, %v347_v33, 0 }
  0x36   : > { %1311 = vrot.lane.b32.xlu1 %v2192_v40, %s1962_s15 }
  0x37   : > { %v1501_v54 = vsel %vm2093_vm9, %v1496_v51, %v1500_v49 }
  0x38   : > { %v1503_v55 = vcombine.low %v2129_v19, %v1501_v54 }
  0x39   : > { %487 = vrot.lane.b32.xlu0 %v369_v25, %s1962_s15  ;;  %v1266_v25 = vsel %vm374_vm0, %v343_v29, 0 }
  0x3a   : > { %1429 = vrot.lane.b32.xlu1 %v2208_v52, %s1962_s15  ;;  %v1517_v12 = vrot.slane %v1503_v55, %v2027_v11  ;;  %v338_v11 = vld [vmem:[%s2357_s4 + $0xe] sm:$0x3] }
  0x3b   : > { %v873_v19 = vsel %vm374_vm0, %v338_v11, 0 }
  0x3c   : > { %v2218_v13 = vcombine.low %v1510_v57, %v1517_v12 }
  0x3e   : > { %1568 = vrot.lane.b32.xlu0 %v2218_v13, %s1962_s15 }
  0x89   : > { %v537_v59 = vpop.permute.xlu0 %536 }
  0x8a   : > { %1836 = vmatmul.mubr.msk.bf16.vlgmr.msra.gmra.mxu1 %vm370_vm6, %v537_v59 }
  0x8b   : > { %1846 = vmatpush3.bf16.msra.mxu1 %v752_v58  ;;  %1847 = vmatprep.mubr.msk.bf16.mxu1 %vm1961_vm1, %v1960_v6 }
  0x8c   : > { %1857 = vmatprep.subr.bf16.mxu1 %v1960_v6 }
  0x99   : > { %v747_v60 = vpop.permute.xlu0 %746 }
  0x9a   : > { %1848 = vmatmul.mubr.msk.bf16.vlgmr.msra.gmra.mxu1 %vm370_vm6, %v747_v60 }
  0x9b   : > { %1858 = vmatpush3.bf16.msra.mxu1 %v873_v19  ;;  %1859 = vmatprep.mubr.msk.bf16.mxu1 %vm1961_vm1, %v1960_v6 }
  0x9c   : > { %1869 = vmatprep.subr.bf16.mxu1 %v1960_v6 }
  0xa0   : > { %v868_v0 = vpop.permute.xlu1 %867 }
  0xa2   : > { %1860 = vmatmul.mubr.msk.bf16.vlgmr.msra.gmra.mxu1 %vm370_vm6, %v868_v0 }
  0xa3   : > { %1870 = vmatpush3.bf16.msra.mxu1 %v994_v63  ;;  %1871 = vmatprep.mubr.msk.bf16.mxu1 %vm1961_vm1, %v1960_v6 }
  0xa4   : > { %1881 = vmatprep.subr.bf16.mxu1 %v1960_v6  ;;  %v989_v4 = vpop.permute.xlu1 %988 }
  0xa7   : > { %v1194_v2 = vpop.permute.xlu0 %1193 }
  0xa8   : > { %v1312_v20 = vpop.permute.xlu1 %1311 }
  0xaa   : > { %1872 = vmatmul.mubr.msk.bf16.vlgmr.msra.gmra.mxu1 %vm370_vm6, %v989_v4 }
  0xab   : > { %v488_v21 = vpop.permute.xlu0 %487  ;;  %1882 = vmatpush3.bf16.msra.mxu1 %v1199_v5  ;;  %1883 = vmatprep.mubr.msk.bf16.mxu1 %vm1961_vm1, %v1960_v6 }
  0xac   : > { %1830 = vmatmul.mubr.msk.bf16.vlgmr.msra.gmra.mxu0 %vm370_vm6, %v488_v21  ;;  %1893 = vmatprep.subr.bf16.mxu1 %v1960_v6  ;;  %v1430_v27 = vpop.permute.xlu1 %1429 }
  0xad   : > { %1840 = vmatpush3.bf16.msra.mxu0 %v701_v7  ;;  %1841 = vmatprep.mubr.msk.bf16.mxu0 %vm1961_vm1, %v1960_v6 }
  0xae   : > { %1851 = vmatprep.subr.bf16.mxu0 %v1960_v6 }
  0xb0   : > { %v1569_v30 = vpop.permute.xlu0 %1568 }
  0xb2   : > { %1884 = vmatmul.mubr.msk.bf16.vlgmr.msra.gmra.mxu1 %vm370_vm6, %v1194_v2 }
  0xb3   : > { %1894 = vmatpush3.bf16.msra.mxu1 %v1317_v9  ;;  %1895 = vmatprep.mubr.msk.bf16.mxu1 %vm1961_vm1, %v1960_v6 }
  0xb4   : > { %1842 = vmatmul.mubr.msk.bf16.vlgmr.msra.gmra.mxu0 %vm370_vm6, %v2145_v43  ;;  %1905 = vmatprep.subr.bf16.mxu1 %v1960_v6  ;;  %v943_v43 = vsel %vm374_vm0, %v339_v18, 0 }
  0xb5   : > { %1852 = vmatpush3.bf16.msra.mxu0 %v822_v10  ;;  %1853 = vmatprep.mubr.msk.bf16.mxu0 %vm1961_vm1, %v1960_v6 }
  0xb6   : > { %1863 = vmatprep.subr.bf16.mxu0 %v1960_v6 }
  0xba   : > { %1896 = vmatmul.mubr.msk.bf16.vlgmr.msra.gmra.mxu1 %vm370_vm6, %v1312_v20 }
  0xbb   : > { %1906 = vmatpush3.bf16.msra.mxu1 %v1435_v56  ;;  %1907 = vmatprep.mubr.msk.bf16.mxu1 %vm1961_vm1, %v1960_v6 }
  0xbc   : > { %1854 = vmatmul.mubr.msk.bf16.vlgmr.msra.gmra.mxu0 %vm370_vm6, %v2170_v24  ;;  %1917 = vmatprep.subr.bf16.mxu1 %v1960_v6  ;;  %v1148_v24 = vsel %vm374_vm0, %v341_v23, 0 }
  0xbd   : > { %1864 = vmatpush3.bf16.msra.mxu0 %v943_v43  ;;  %1865 = vmatprep.mubr.msk.bf16.mxu0 %vm1961_vm1, %v1960_v6 }
  0xbe   : > { %1875 = vmatprep.subr.bf16.mxu0 %v1960_v6 }
  0xc2   : > { %1908 = vmatmul.mubr.msk.bf16.vlgmr.msra.gmra.mxu1 %vm370_vm6, %v1430_v27 }
  0xc3   : > { %1918 = vmatpush3.bf16.msra.mxu1 %v1574_v28  ;;  %1919 = vmatprep.mubr.msk.bf16.mxu1 %vm1961_vm1, %v1960_v6 }
  0xc4   : > { %1866 = vmatmul.mubr.msk.bf16.vlgmr.msra.gmra.mxu0 %vm370_vm6, %v2178_v31  ;;  %v345_v31 = vld [vmem:[%s2357_s4 + $0x1c] sm:$0x3] }
  0xc5   : > { %1876 = vmatpush3.bf16.msra.mxu0 %v1148_v24  ;;  %1877 = vmatprep.mubr.msk.bf16.mxu0 %vm1961_vm1, %v1960_v6  ;;  %v1384_v32 = vsel %vm374_vm0, %v345_v31, 0 }
  0xc6   : > { %1887 = vmatprep.subr.bf16.mxu0 %v1960_v6 }
  0xca   : > { %1920 = vmatmul.mubr.msk.bf16.vlgmr.msra.gmra.mxu1 %vm370_vm6, %v1569_v30 }
  0xcc   : > { %1878 = vmatmul.mubr.msk.bf16.vlgmr.msra.gmra.mxu0 %vm370_vm6, %v2194_v45 }
  0xcd   : > { %1888 = vmatpush3.bf16.msra.mxu0 %v1266_v25  ;;  %1889 = vmatprep.mubr.msk.bf16.mxu0 %vm1961_vm1, %v1960_v6 }
  0xce   : > { %1899 = vmatprep.subr.bf16.mxu0 %v1960_v6 }
  0xd4   : > { %1890 = vmatmul.mubr.msk.bf16.vlgmr.msra.gmra.mxu0 %vm370_vm6, %v2192_v40 }
  0xd5   : > { %1900 = vmatpush3.bf16.msra.mxu0 %v1384_v32  ;;  %1901 = vmatprep.mubr.msk.bf16.mxu0 %vm1961_vm1, %v1960_v6 }
  0xd6   : > { %1911 = vmatprep.subr.bf16.mxu0 %v1960_v6 }
  0xd7   : > { %v480_v35 = vpop.f32.mrf.mxu1 }
  0xd9   : > { %v1825_v14 = vpop.f32.mrf.mxu1 }
  0xdb   : > { %v483_v15 = vpop.f32.mrf.mxu1 }
  0xdc   : > { %1902 = vmatmul.mubr.msk.bf16.vlgmr.msra.gmra.mxu0 %vm370_vm6, %v2208_v52 }
  0xdd   : > { %1912 = vmatpush3.bf16.msra.mxu0 %v1523_v34  ;;  %1913 = vmatprep.mubr.msk.bf16.mxu0 %vm1961_vm1, %v1960_v6  ;;  %v1826_v16 = vpop.f32.mrf.mxu1 }
  0xe4   : > { %1914 = vmatmul.mubr.msk.bf16.vlgmr.msra.gmra.mxu0 %vm370_vm6, %v2218_v13 }
  0xef   : > { %v412_v36 = vpop.f32.mrf.mxu0 }
  0xf0   : > { %v481_v37 = vadd.f32 %v480_v35, %v412_v36 }
  0xf1   : > { %v1819_v38 = vpop.f32.mrf.mxu0 }
  0xf3   : > { %v415_v39 = vpop.f32.mrf.mxu0 }
  0xf4   : > { %v484_v40 = vadd.f32 %v483_v15, %v415_v39 }
  0xf5   : > { %v1820_v41 = vpop.f32.mrf.mxu0 }
 0x14a   : > { %v578_v42 = vpop.f32.mrf.mxu1 }
 0x14c   : > { %v1837_v44 = vpop.f32.mrf.mxu1 }
 0x14e   : > { %v581_v45 = vpop.f32.mrf.mxu1 }
 0x150   : > { %v1838_v46 = vpop.f32.mrf.mxu1 }
 0x15a   : > { %v788_v26 = vpop.f32.mrf.mxu1 }
 0x15c   : > { %v1849_v47 = vpop.f32.mrf.mxu1 }
 0x15e   : > { %v791_v48 = vpop.f32.mrf.mxu1 }
 0x160   : > { %v1850_v49 = vpop.f32.mrf.mxu1 }
 0x162   : > { %v909_v6 = vpop.f32.mrf.mxu1 }
 0x164   : > { %v1861_v50 = vpop.f32.mrf.mxu1 }
 0x166   : > { %v912_v51 = vpop.f32.mrf.mxu1 }
 0x168   : > { %v1862_v52 = vpop.f32.mrf.mxu1 }
 0x16a   : > { %v1030_v54 = vpop.f32.mrf.mxu1 }
 0x16c   : > { %v529_v55 = vpop.f32.mrf.mxu0  ;;  %v1873_v57 = vpop.f32.mrf.mxu1 }
 0x16d   : > { %v579_v3 = vadd.f32 %v578_v42, %v529_v55 }
 0x16e   : > { %v1831_v12 = vpop.f32.mrf.mxu0  ;;  %v1033_v13 = vpop.f32.mrf.mxu1 }
 0x16f   : > { %v795_v8 = vadd.f32 %v788_v26, %v579_v3 }
 0x170   : > { %v532_v53 = vpop.f32.mrf.mxu0  ;;  %v1874_v58 = vpop.f32.mrf.mxu1 }
 0x171   : > { %v582_v9 = vadd.f32 %v581_v45, %v532_v53  ;;  %v916_v43 = vadd.f32 %v909_v6, %v795_v8 }
 0x172   : > { %v1832_v59 = vpop.f32.mrf.mxu0  ;;  %v1235_v11 = vpop.f32.mrf.mxu1 }
 0x173   : > { %v796_v61 = vadd.f32 %v791_v48, %v582_v9  ;;  %v1037_v24 = vadd.f32 %v1030_v54, %v916_v43 }
 0x174   : > { %v737_v19 = vpop.f32.mrf.mxu0  ;;  %v1885_v60 = vpop.f32.mrf.mxu1 }
 0x175   : > { %v744_v62 = vadd.f32 %v737_v19, %v481_v37  ;;  %v917_v25 = vadd.f32 %v912_v51, %v796_v61  ;;  %v1242_v31 = vadd.f32 %v1235_v11, %v1037_v24 }
 0x176   : > { %v1843_v63 = vpop.f32.mrf.mxu0  ;;  %v1238_v0 = vpop.f32.mrf.mxu1 }
 0x177   : > { %v1038_v35 = vadd.f32 %v1033_v13, %v917_v25 }
 0x178   : > { %v740_v1 = vpop.f32.mrf.mxu0  ;;  %v1886_v2 = vpop.f32.mrf.mxu1 }
 0x179   : > { %v745_v4 = vadd.f32 %v740_v1, %v484_v40  ;;  %v1243_v36 = vadd.f32 %v1238_v0, %v1038_v35 }
 0x17a   : > { %v1844_v5 = vpop.f32.mrf.mxu0  ;;  %v1353_v7 = vpop.f32.mrf.mxu1 }
 0x17b   : > { %v1360_v14 = vadd.f32 %v1353_v7, %v1242_v31  ;;  %v1771_v5 = vld [vmem:[%s2358_s5] ss:$0 sm:$0xff] }
 0x17c   : > { %v858_v21 = vpop.f32.mrf.mxu0  ;;  %v1897_v22 = vpop.f32.mrf.mxu1 }
 0x17d   : > { %v865_v10 = vadd.f32 %v858_v21, %v744_v62 }
 0x17e   : > { %v1855_v17 = vpop.f32.mrf.mxu0  ;;  %v1356_v18 = vpop.f32.mrf.mxu1 }
 0x17f   : > { %v1361_v41 = vadd.f32 %v1356_v18, %v1243_v36 }
 0x180   : > { %v861_v20 = vpop.f32.mrf.mxu0  ;;  %v1898_v56 = vpop.f32.mrf.mxu1 }
 0x181   : > { %v866_v23 = vadd.f32 %v861_v20, %v745_v4 }
 0x182   : > { %v1856_v27 = vpop.f32.mrf.mxu0  ;;  %v1471_v28 = vpop.f32.mrf.mxu1 }
 0x183   : > { %v1478_v38 = vadd.f32 %v1471_v28, %v1360_v14 }
 0x184   : > { %v979_v29 = vpop.f32.mrf.mxu0  ;;  %v1909_v30 = vpop.f32.mrf.mxu1 }
 0x185   : > { %v986_v32 = vadd.f32 %v979_v29, %v865_v10 }
 0x186   : > { %v1867_v33 = vpop.f32.mrf.mxu0  ;;  %v1474_v34 = vpop.f32.mrf.mxu1 }
 0x187   : > { %v1479_v26 = vadd.f32 %v1474_v34, %v1361_v41 }
 0x188   : > { %v982_v15 = vpop.f32.mrf.mxu0  ;;  %v1910_v16 = vpop.f32.mrf.mxu1 }
 0x189   : > { %v987_v37 = vadd.f32 %v982_v15, %v866_v23 }
 0x18a   : > { %v1868_v39 = vpop.f32.mrf.mxu0  ;;  %v1610_v40 = vpop.f32.mrf.mxu1 }
 0x18b   : > { %v1617_v42 = vadd.f32 %v1610_v40, %v1478_v38 }
 0x18c   : > { %v1184_v44 = vpop.f32.mrf.mxu0  ;;  %v1921_v45 = vpop.f32.mrf.mxu1 }
 0x18d   : > { %v1191_v46 = vadd.f32 %v1184_v44, %v986_v32  ;;  %1621 = vrot.lane.b32.xlu1 %v1617_v42, %s1963_s29 }
 0x18e   : > { %v1879_v47 = vpop.f32.mrf.mxu0  ;;  %v1613_v48 = vpop.f32.mrf.mxu1 }
 0x18f   : > { %v1618_v49 = vadd.f32 %v1613_v48, %v1479_v26 }
 0x190   : > { %v1187_v6 = vpop.f32.mrf.mxu0  ;;  %v1922_v50 = vpop.f32.mrf.mxu1 }
 0x191   : > { %v1192_v51 = vadd.f32 %v1187_v6, %v987_v37  ;;  %1623 = vrot.lane.b32.xlu0 %v1618_v49, %s1963_s29 }
 0x192   : > { %v1880_v52 = vpop.f32.mrf.mxu0 }
 0x194   : > { %v1302_v54 = vpop.f32.mrf.mxu0 }
 0x195   : > { %v1309_v55 = vadd.f32 %v1302_v54, %v1191_v46 }
 0x196   : > { %v1891_v57 = vpop.f32.mrf.mxu0 }
 0x198   : > { %v1305_v12 = vpop.f32.mrf.mxu0 }
 0x199   : > { %v1310_v13 = vadd.f32 %v1305_v12, %v1192_v51 }
 0x19a   : > { %v1892_v53 = vpop.f32.mrf.mxu0 }
 0x19c   : > { %v1420_v58 = vpop.f32.mrf.mxu0 }
 0x19d   : > { %v1427_v59 = vadd.f32 %v1420_v58, %v1309_v55 }
 0x19e   : > { %v1903_v11 = vpop.f32.mrf.mxu0 }
 0x1a0   : > { %v1423_v19 = vpop.f32.mrf.mxu0 }
 0x1a1   : > { %v1428_v60 = vadd.f32 %v1423_v19, %v1310_v13 }
 0x1a2   : > { %v1904_v62 = vpop.f32.mrf.mxu0 }
 0x1a4   : > { %v1559_v63 = vpop.f32.mrf.mxu0 }
 0x1a5   : > { %v1566_v0 = vadd.f32 %v1559_v63, %v1427_v59 }
 0x1a6   : > { %v1915_v1 = vpop.f32.mrf.mxu0 }
 0x1a8   : > { %v1562_v2 = vpop.f32.mrf.mxu0 }
 0x1a9   : > { %v1567_v3 = vadd.f32 %v1562_v2, %v1428_v60 }
 0x1aa   : > { %v1916_v4 = vpop.f32.mrf.mxu0 }
 0x1ff   : > { %v1622_v7 = vpop.permute.xlu1 %1621 }
 0x200   : > { %v1627_v21 = vsel %vm370_vm6, %v1566_v0, %v1622_v7 }
 0x201   : > { %v1636_v22 = vadd.f32 %v1771_v5, %v1627_v21 }
 0x203   : > { %v1638_v8 = vmax.f32 %v1636_v22, 0.0  ;;  %v1624_v9 = vpop.permute.xlu0 %1623 }
 0x204   : > { %v1628_v10 = vsel %vm370_vm6, %v1567_v3, %v1624_v9 }
 0x205   : > { %v1777_v17 = vpack.c.bf16 %v1638_v8, %v1638_v8  ;;  %v1637_v18 = vadd.f32 %v1771_v5, %v1628_v10 }
 0x207   : > { %1649 = vst.msk [vmem:[%s311_s11] sm:$0xf] %vm1648_vm10, %v1777_v17  ;;  %v1639_v20 = vmax.f32 %v1637_v18, 0.0 }
 0x209   : > { %v1778_v56 = vpack.c.bf16 %v1639_v20, %v1639_v20 }
 0x20b   : > { %1650 = vst.msk [vmem:[%s311_s11 + $0x4] sm:$0xf] %vm1648_vm10, %v1778_v56 }
 0x20c PF: > { %s16_s21 = sadd.s32 1, %s1957_s21  }
 0x20d   : > { %p13_p4 = scmp.ge.s32.totalorder %s16_s21, 6  }
 0x20f   :  { %15 = sbr.rel (!%p13_p4) target bundleno = 1 (0x1), region = 83 }

</bundles_post_ra>
